<compile_context>
chip_gen: v7x
topology: tpu7x:2x2x1
jax: 0.10.0
libtpu: 0.0.40
codegen_flags: <defaults>
</compile_context>

<pallas_src>
import math
from functools import partial

import jax
import jax.numpy as jnp
from jax import lax
from jax.experimental import pallas as pl
from jax.experimental.pallas import tpu as pltpu


# ------------------------- shared math (f32, jnp) ---------------------------

def _layer_norm(x, g, b, eps=1e-5):
    # VITS LayerNorm: normalize over the channel (last) dim
    mu = jnp.mean(x, axis=-1, keepdims=True)
    var = jnp.mean(jnp.square(x - mu), axis=-1, keepdims=True)
    return (x - mu) * lax.rsqrt(var + eps) * g + b


# ------------------------- kernel-side helpers -------------------------------

def _dot2(a, w, cdt):
    """Matmul over the last dim of `a`; leading dims flattened to (Bb*T, K) to
    fill MXU rows.  Activation optionally cast to the MXU dtype; weights are
    already pre-cast in the wrapper.  f32 accumulate."""
    lead = a.shape[:-1]
    a2 = a.reshape((-1, a.shape[-1]))
    if cdt is not None:
        a2 = a2.astype(cdt)
    y = jnp.dot(a2, w, preferred_element_type=jnp.float32)
    return y.reshape(lead + (w.shape[-1],))


def _conv1d_k3_same_b(x, w, b, cdt):
    # x: (Bb, T, Cin), w: (3, Cin, Cout), b: (1, Cout). torch Conv1d(k=3, pad=1).
    Bb, _, cin = x.shape
    zero = jnp.zeros((Bb, 1, cin), x.dtype)
    x_prev = jnp.concatenate([zero, x[:, :-1]], axis=1)     # x[t-1]
    x_next = jnp.concatenate([x[:, 1:], zero], axis=1)      # x[t+1]
    if cin == 1:  # avoid a K=1 matmul; broadcast multiply is identical (VPU, f32)
        return x_prev * w[0] + x * w[1] + x_next * w[2] + b
    return (_dot2(x_prev, w[0], cdt) + _dot2(x, w[1], cdt)
            + _dot2(x_next, w[2], cdt) + b)


def _conv1d_k3_causal_b(x, w, b, cdt):
    # causal padding (pad_left = k-1 = 2), as in attentions.FFN(causal=True)
    # TODO(synk): for T % 8 == 0 these tap shifts could use pltpu.roll on the
    # sublane axis instead of zero-pad + concat copies.
    Bb, _, cin = x.shape
    z1 = jnp.zeros((Bb, 1, cin), x.dtype)
    z2 = jnp.zeros((Bb, 2, cin), x.dtype)
    x_m1 = jnp.concatenate([z1, x[:, :-1]], axis=1)
    x_m2 = jnp.concatenate([z2, x[:, :-2]], axis=1)
    return (_dot2(x_m2, w[0], cdt) + _dot2(x_m1, w[1], cdt)
            + _dot2(x, w[2], cdt) + b)


def _ffn_causal_b(x, mask, w1, b1, w2, b2, cdt):
    h = _conv1d_k3_causal_b(x * mask, w1, b1, cdt)
    h = jnp.maximum(h, 0.0)                    # relu (activation=None branch)
    h = _conv1d_k3_causal_b(h * mask, w2, b2, cdt)
    return h * mask


def _attention_b(x, wqkv, bqkv, wo, bo, n_heads, bias, cdt):
    """Causal MHA.  bias: (1, T, T) additive causal bias, hoisted out of the
    layer loop.  Heads are folded into the einsum batch axis (head h of batch
    b sits at row h*Bb + b) using only lane slices + leading-axis concats —
    no per-(batch,head) Python loop and no unsupported >2D transposes.
    NOTE: no key-padding mask — matches VITS FFT (causal-only); valid queries
    never attend padded keys because padding is a suffix."""
    Bb, T, H = x.shape
    dh = H // n_heads
    scale = 1.0 / math.sqrt(dh)
    qkv = _dot2(x, wqkv, cdt) + bqkv           # fused Q/K/V: one (H, 3H) matmul
    if cdt is not None:
        qkv = qkv.astype(cdt)

    def split_heads(off):                      # -> (n_heads*Bb, T, dh)
        return jnp.concatenate(
            [qkv[:, :, off + h * dh: off + (h + 1) * dh] for h in range(n_heads)],
            axis=0)

    q = split_heads(0) * scale
    k = split_heads(H)
    v = split_heads(2 * H)
    s = jnp.einsum('btd,bsd->bts', q, k, preferred_element_type=jnp.float32)
    s = s + bias                               # additive causal bias (0 / -1e4)
    s = s - jnp.max(s, axis=-1, keepdims=True)
    p = jnp.exp(s)
    denom = jnp.sum(p, axis=-1, keepdims=True)
    if cdt is not None:
        p = (p * pl.reciprocal(denom, approx=True)).astype(cdt)  # EUP slot
    else:
        p = p / denom                          # exact in the strict f32 path
    o = jnp.einsum('bts,bsd->btd', p, v, preferred_element_type=jnp.float32)
    o = jnp.concatenate([o[h * Bb:(h + 1) * Bb] for h in range(n_heads)],
                        axis=-1)               # (Bb, T, H) head merge
    return _dot2(o, wo, cdt) + bo


# --------------------------------- kernel ------------------------------------

def f0_decoder_kernel(x_ref, f0_ref, maskc_ref, maskr_ref, spk_ref,
                      cond_w_ref, cond_b_ref, f0w_ref, f0b_ref,
                      pre_w_ref, pre_b_ref,
                      qkvw_ref, qkvb_ref, ow_ref, ob_ref,
                      ln0g_ref, ln0b_ref,
                      f1w_ref, f1b_ref, f2w_ref, f2b_ref,
                      ln1g_ref, ln1b_ref, pwt_ref, pbt_ref,
                      out_ref, *, n_layers, n_heads, cdt):
    Bb, T, H = x_ref.shape
    x = x_ref[...]                 # (Bb, T, H)   (torch.detach is a fwd no-op)
    maskc = maskc_ref[...]         # (Bb, T, 1)

    # additive causal bias — built once, reused by every layer (hoisted)
    row = lax.broadcasted_iota(jnp.int32, (T, T), 0)
    col = lax.broadcasted_iota(jnp.int32, (T, T), 1)
    attn_bias = jnp.where(col <= row, 0.0, -1e4).astype(jnp.float32)[None]

    # x = x + cond(spk_emb)             (1x1 conv == channel matmul)
    x = x + _dot2(spk_ref[...], cond_w_ref[...], cdt) + cond_b_ref[...]
    # x += f0_prenet(norm_f0)           (Conv1d(1, H, 3, padding=1))
    x = x + _conv1d_k3_same_b(f0_ref[...], f0w_ref[...], f0b_ref[...], cdt)
    # x = prenet(x) * x_mask            (Conv1d(H, H, 3, padding=1))
    x = _conv1d_k3_same_b(x, pre_w_ref[...], pre_b_ref[...], cdt) * maskc

    # decoder = attentions.FFT(...)     (eval mode: dropout = identity)
    x = x * maskc

    def layer_body(l, xc):
        y = _attention_b(xc, qkvw_ref[l], qkvb_ref[l], ow_ref[l], ob_ref[l],
                         n_heads, attn_bias, cdt)
        xc = _layer_norm(xc + y, ln0g_ref[l], ln0b_ref[l])
        y = _ffn_causal_b(xc, maskc, f1w_ref[l], f1b_ref[l],
                          f2w_ref[l], f2b_ref[l], cdt)
        return _layer_norm(xc + y, ln1g_ref[l], ln1b_ref[l])

    x = lax.fori_loop(0, n_layers, layer_body, x)
    x = x * maskc

    # x = proj(x) * x_mask — one batched dot_general emitting (out_ch, T)
    # directly so the output store is lane-dense (T on the lane axis, NCW).
    pwt = pwt_ref[...]             # (out_ch, H)
    xo = x.astype(cdt) if cdt is not None else x
    pw_b = jnp.broadcast_to(pwt, (Bb,) + pwt.shape)          # (Bb, out_ch, H)
    proj = lax.dot_general(pw_b, xo, (((2,), (2,)), ((0,), (0,))),
                           preferred_element_type=jnp.float32)  # (Bb, out_ch, T)
    out_ref[...] = (proj + pbt_ref[...][None]) * maskr_ref[...]


# --------------------------------- wrapper -----------------------------------

def _pick_vmem_limit():
    """~3/4 of the chip's physical VMEM: ~48 MiB on v7x (64 MiB/TC),
    ~96 MiB on v5e/v6e (128 MiB)."""
    try:
        phys = int(pltpu.get_tpu_info().vmem_capacity_bytes)
    except Exception:
        phys = 64 * 1024 * 1024
    return int(min(phys * 3 // 4, 112 * 1024 * 1024))


def f0_decoder_forward(x_bct, norm_f0_b1t, x_mask_b1t, spk_bct, params,
                       *, n_layers, n_heads, batch_block=1,
                       mxu_dtype=jnp.bfloat16, vmem_limit_bytes=None):
    # batch_block guidance: pick Bb so Bb*T >= ~256 (fills MXU rows) and, on
    # v7x, keep the grid extent (B // Bb) >= 2 and even for megacore sharding;
    # on v5e/v6e the grid is a serial loop so Bb can be as large as VMEM allows.
    B, H, T = x_bct.shape
    spk_ch = spk_bct.shape[1]
    out_ch = params["proj_w"].shape[-1]

    Bb = batch_block if (batch_block and B % batch_block == 0) else 1

    # NCW -> (B, T, C) for activations (channel on the lane axis in-kernel).
    x = jnp.transpose(x_bct, (0, 2, 1))
    f0 = jnp.transpose(norm_f0_b1t, (0, 2, 1))
    maskc = jnp.transpose(x_mask_b1t, (0, 2, 1))
    spk = jnp.transpose(spk_bct, (0, 2, 1))
    maskr = x_mask_b1t                         # (B, 1, T): row layout for the
                                               # lane-dense output masking

    cdt = mxu_dtype

    def wcast(a):                              # pre-cast matmul weights ONCE
        return a.astype(cdt) if cdt is not None else a

    # fused QKV weights; projection pre-transposed for the lane-dense output
    wqkv = wcast(jnp.concatenate([params["attn_qw"], params["attn_kw"],
                                  params["attn_vw"]], axis=-1))     # (L, H, 3H)
    bqkv = jnp.concatenate([params["attn_qb"], params["attn_kb"],
                            params["attn_vb"]], axis=-1)            # (L, 1, 3H)
    pwt = wcast(jnp.transpose(params["proj_w"]))                    # (out_ch, H)
    pbt = jnp.transpose(params["proj_b"])                           # (out_ch, 1)

    # TODO(synk): at realistic sizes (H~192, filter~768, L>=4) stream weights
    # per layer via a second "arbitrary" grid axis to fit v7x's 64 MiB VMEM;
    # here all-layer weights are tiny and stay fully resident.
    weights = [wcast(params["cond_w"]), params["cond_b"],
               params["f0_w"], params["f0_b"],          # f0 conv stays f32 (VPU)
               wcast(params["pre_w"]), params["pre_b"],
               wqkv, bqkv, wcast(params["attn_ow"]), params["attn_ob"],
               params["ln0_g"], params["ln0_b"],
               wcast(params["ffn1_w"]), params["ffn1_b"],
               wcast(params["ffn2_w"]), params["ffn2_b"],
               params["ln1_g"], params["ln1_b"], pwt, pbt]

    def data_spec(c):
        return pl.BlockSpec((Bb, T, c), lambda i: (i, 0, 0))

    def row_spec(c):
        return pl.BlockSpec((Bb, c, T), lambda i: (i, 0, 0))

    def full_spec(a):
        return pl.BlockSpec(a.shape, lambda i, _nd=a.ndim: (0,) * _nd)

    in_specs = ([data_spec(H), data_spec(1), data_spec(1), row_spec(1),
                 data_spec(spk_ch)] + [full_spec(w) for w in weights])

    limit = vmem_limit_bytes if vmem_limit_bytes is not None else _pick_vmem_limit()

    out = pl.pallas_call(
        partial(f0_decoder_kernel, n_layers=n_layers, n_heads=n_heads, cdt=cdt),
        out_shape=jax.ShapeDtypeStruct((B, out_ch, T), jnp.float32),
        grid=(B // Bb,),
        in_specs=in_specs,
        out_specs=pl.BlockSpec((Bb, out_ch, T), lambda i: (i, 0, 0)),
        compiler_params=pltpu.CompilerParams(
            dimension_semantics=("parallel",),
            vmem_limit_bytes=limit),
    )(x, f0, maskc, maskr, spk, *weights)

    return out   # already (B, out_channels, T) — torch layout, no transpose


# ------------------------- deterministic parameters -------------------------

def init_params(key, hidden, filter_ch, n_heads, n_layers, out_ch, spk_ch):
    keys = iter(jax.random.split(key, 64))

    def w(shape, scale=0.1):
        return jax.random.normal(next(keys), shape, jnp.float32) * scale

    p = {}
    p["cond_w"] = w((spk_ch, hidden));          p["cond_b"] = w((1, hidden))
    p["f0_w"] = w((3, 1, hidden));              p["f0_b"] = w((1, hidden))
    p["pre_w"] = w((3, hidden, hidden));        p["pre_b"] = w((1, hidden))
    qw = w((n_layers, hidden, hidden));         qb = w((n_layers, 1, hidden))
    p["attn_qw"], p["attn_qb"] = qw, qb
    p["attn_kw"], p["attn_kb"] = qw, qb         # proximal_init=True: K copies Q
    p["attn_vw"] = w((n_layers, hidden, hidden)); p["attn_vb"] = w((n_layers, 1, hidden))
    p["attn_ow"] = w((n_layers, hidden, hidden)); p["attn_ob"] = w((n_layers, 1, hidden))
    p["ln0_g"] = jnp.ones((n_layers, 1, hidden)); p["ln0_b"] = jnp.zeros((n_layers, 1, hidden))
    p["ffn1_w"] = w((n_layers, 3, hidden, filter_ch)); p["ffn1_b"] = w((n_layers, 1, filter_ch))
    p["ffn2_w"] = w((n_layers, 3, filter_ch, hidden)); p["ffn2_b"] = w((n_layers, 1, hidden))
    p["ln1_g"] = jnp.ones((n_layers, 1, hidden)); p["ln1_b"] = jnp.zeros((n_layers, 1, hidden))
    p["proj_w"] = w((hidden, out_ch));          p["proj_b"] = w((1, out_ch))
    return p


# ------------------------ pure-JAX reference (unbatched) ---------------------

def _conv1d_k3_same(x, w, b):
    cin = x.shape[1]
    zero = jnp.zeros((1, cin), x.dtype)
    x_prev = jnp.concatenate([zero, x[:-1]], axis=0)
    x_next = jnp.concatenate([x[1:], zero], axis=0)
    if cin == 1:
        return x_prev * w[0] + x * w[1] + x_next * w[2] + b
    return jnp.dot(x_prev, w[0]) + jnp.dot(x, w[1]) + jnp.dot(x_next, w[2]) + b


def _conv1d_k3_causal(x, w, b):
    cin = x.shape[1]
    z1 = jnp.zeros((1, cin), x.dtype)
    z2 = jnp.zeros((2, cin), x.dtype)
    x_m1 = jnp.concatenate([z1, x[:-1]], axis=0)
    x_m2 = jnp.concatenate([z2, x[:-2]], axis=0)
    return jnp.dot(x_m2, w[0]) + jnp.dot(x_m1, w[1]) + jnp.dot(x, w[2]) + b


def _causal_mha(x, wq, bq, wk, bk, wv, bv, wo, bo, n_heads):
    T, C = x.shape
    dh = C // n_heads
    q = jnp.dot(x, wq) + bq
    k = jnp.dot(x, wk) + bk
    v = jnp.dot(x, wv) + bv
    row = lax.broadcasted_iota(jnp.int32, (T, T), 0)
    col = lax.broadcasted_iota(jnp.int32, (T, T), 1)
    causal = col <= row
    scale = 1.0 / math.sqrt(dh)
    outs = []
    for h in range(n_heads):
        sl = slice(h * dh, (h + 1) * dh)
        s = jnp.dot(q[:, sl] * scale, k[:, sl].T)
        s = jnp.where(causal, s, -1e4)
        s = s - jnp.max(s, axis=-1, keepdims=True)
        p = jnp.exp(s)
        p = p / jnp.sum(p, axis=-1, keepdims=True)
        outs.append(jnp.dot(p, v[:, sl]))
    return jnp.dot(jnp.concatenate(outs, axis=-1), wo) + bo


def _ffn_causal(x, mask, w1, b1, w2, b2):
    h = _conv1d_k3_causal(x * mask, w1, b1)
    h = jnp.maximum(h, 0.0)
    h = _conv1d_k3_causal(h * mask, w2, b2)
    return h * mask


def _forward_one(x, f0, mask, spk, params, n_layers, n_heads):
    x = x + jnp.dot(spk, params["cond_w"]) + params["cond_b"]
    x = x + _conv1d_k3_same(f0, params["f0_w"], params["f0_b"])
    x = _conv1d_k3_same(x, params["pre_w"], params["pre_b"]) * mask
    x = x * mask
    for l in range(n_layers):
        y = _causal_mha(x, params["attn_qw"][l], params["attn_qb"][l],
                        params["attn_kw"][l], params["attn_kb"][l],
                        params["attn_vw"][l], params["attn_vb"][l],
                        params["attn_ow"][l], params["attn_ob"][l], n_heads)
        x = _layer_norm(x + y, params["ln0_g"][l], params["ln0_b"][l])
        y = _ffn_causal(x, mask, params["ffn1_w"][l], params["ffn1_b"][l],
                        params["ffn2_w"][l], params["ffn2_b"][l])
        x = _layer_norm(x + y, params["ln1_g"][l], params["ln1_b"][l])
    x = x * mask
    return (jnp.dot(x, params["proj_w"]) + params["proj_b"]) * mask


# --------------------------------- main --------------------------------------

if __name__ == "__main__":
    B, T = 4, 16
    hidden, filt = 32, 64
    n_heads, n_layers = 2, 2
    out_ch, spk_ch = 1, 8
    # TODO(synk): p_dropout is eval-mode identity here; training-mode dropout
    # is not implemented in the kernel.

    key = jax.random.PRNGKey(0)
    k1, k2, k3, kp = jax.random.split(key, 4)
    x = jax.random.normal(k1, (B, hidden, T), jnp.float32)          # (B, C, T)
    norm_f0 = jax.random.normal(k2, (B, 1, T), jnp.float32)
    lengths = jnp.array([T, T - 4, T - 7, T])
    x_mask = (jnp.arange(T)[None, None, :] < lengths[:, None, None]).astype(jnp.float32)
    spk_emb = jax.random.normal(k3, (B, spk_ch, T), jnp.float32)
    params = init_params(kp, hidden, filt, n_heads, n_layers, out_ch, spk_ch)

    # strict f32 MXU path (exact softmax division) vs. pure-JAX reference
    out = f0_decoder_forward(x, norm_f0, x_mask, spk_emb, params,
                             n_layers=n_layers, n_heads=n_heads,
                             batch_block=2, mxu_dtype=None)
    out = jax.block_until_ready(out)
    assert out.shape == (B, out_ch, T)

    ref = jax.vmap(lambda xx, ff, mm, ss: _forward_one(
        xx.T, ff.T, mm.T, ss.T, params, n_layers, n_heads))(
            x, norm_f0, x_mask, spk_emb)
    ref = jnp.transpose(ref, (0, 2, 1))                              # (B,out,T)
    err = float(jnp.max(jnp.abs(out - ref)))
    assert bool(jnp.allclose(out, ref, atol=1e-2, rtol=1e-2)), err

    # bf16 MXU operands (recommended on v5e/v6e/v7x), f32 accumulate — smoke check.
    out_bf = f0_decoder_forward(x, norm_f0, x_mask, spk_emb, params,
                                n_layers=n_layers, n_heads=n_heads,
                                batch_block=2, mxu_dtype=jnp.bfloat16)
    out_bf = jax.block_until_ready(out_bf)
    bf_err = float(jnp.max(jnp.abs(out_bf - ref)))
    assert bool(jnp.all(jnp.isfinite(out_bf))) and bf_err < 0.3, bf_err

    print("KERNEL_OK")
</pallas_src>

<mosaic_0001>
module attributes {stable_mosaic.version = 11 : i64} {
  func.func @f0_decoder_kernel(%arg0: i32, %arg1: memref<2x16x32xf32, #tpu.memory_space<vmem>>, %arg2: memref<2x16x1xf32, #tpu.memory_space<vmem>>, %arg3: memref<2x16x1xf32, #tpu.memory_space<vmem>>, %arg4: memref<2x1x16xf32, #tpu.memory_space<vmem>>, %arg5: memref<2x16x8xf32, #tpu.memory_space<vmem>>, %arg6: memref<8x32xf32, #tpu.memory_space<vmem>>, %arg7: memref<1x32xf32, #tpu.memory_space<vmem>>, %arg8: memref<3x1x32xf32, #tpu.memory_space<vmem>>, %arg9: memref<1x32xf32, #tpu.memory_space<vmem>>, %arg10: memref<3x32x32xf32, #tpu.memory_space<vmem>>, %arg11: memref<1x32xf32, #tpu.memory_space<vmem>>, %arg12: memref<2x32x96xf32, #tpu.memory_space<vmem>>, %arg13: memref<2x1x96xf32, #tpu.memory_space<vmem>>, %arg14: memref<2x32x32xf32, #tpu.memory_space<vmem>>, %arg15: memref<2x1x32xf32, #tpu.memory_space<vmem>>, %arg16: memref<2x1x32xf32, #tpu.memory_space<vmem>>, %arg17: memref<2x1x32xf32, #tpu.memory_space<vmem>>, %arg18: memref<2x3x32x64xf32, #tpu.memory_space<vmem>>, %arg19: memref<2x1x64xf32, #tpu.memory_space<vmem>>, %arg20: memref<2x3x64x32xf32, #tpu.memory_space<vmem>>, %arg21: memref<2x1x32xf32, #tpu.memory_space<vmem>>, %arg22: memref<2x1x32xf32, #tpu.memory_space<vmem>>, %arg23: memref<2x1x32xf32, #tpu.memory_space<vmem>>, %arg24: memref<1x32xf32, #tpu.memory_space<vmem>>, %arg25: memref<1x1xf32, #tpu.memory_space<vmem>>, %arg26: memref<2x1x16xf32, #tpu.memory_space<vmem>>) attributes {dimension_semantics = [#tpu.dimension_semantics<parallel>], iteration_bounds = array<i64: 2>, scalar_prefetch = 0 : i64, scratch_operands = 0 : i64, tpu.core_type = #tpu.core_type<tc>, window_params = [{transform_indices = @transform_0, window_bounds = array<i64: 2, 16, 32>}, {transform_indices = @transform_1, window_bounds = array<i64: 2, 16, 1>}, {transform_indices = @transform_2, window_bounds = array<i64: 2, 16, 1>}, {transform_indices = @transform_3, window_bounds = array<i64: 2, 1, 16>}, {transform_indices = @transform_4, window_bounds = array<i64: 2, 16, 8>}, {pipeline_mode = #tpu.pipeline_mode<synchronous>, transform_indices = @transform_5, window_bounds = array<i64: 8, 32>}, {pipeline_mode = #tpu.pipeline_mode<synchronous>, transform_indices = @transform_6, window_bounds = array<i64: 1, 32>}, {pipeline_mode = #tpu.pipeline_mode<synchronous>, transform_indices = @transform_7, window_bounds = array<i64: 3, 1, 32>}, {pipeline_mode = #tpu.pipeline_mode<synchronous>, transform_indices = @transform_8, window_bounds = array<i64: 1, 32>}, {pipeline_mode = #tpu.pipeline_mode<synchronous>, transform_indices = @transform_9, window_bounds = array<i64: 3, 32, 32>}, {pipeline_mode = #tpu.pipeline_mode<synchronous>, transform_indices = @transform_10, window_bounds = array<i64: 1, 32>}, {pipeline_mode = #tpu.pipeline_mode<synchronous>, transform_indices = @transform_11, window_bounds = array<i64: 2, 32, 96>}, {pipeline_mode = #tpu.pipeline_mode<synchronous>, transform_indices = @transform_12, window_bounds = array<i64: 2, 1, 96>}, {pipeline_mode = #tpu.pipeline_mode<synchronous>, transform_indices = @transform_13, window_bounds = array<i64: 2, 32, 32>}, {pipeline_mode = #tpu.pipeline_mode<synchronous>, transform_indices = @transform_14, window_bounds = array<i64: 2, 1, 32>}, {pipeline_mode = #tpu.pipeline_mode<synchronous>, transform_indices = @transform_15, window_bounds = array<i64: 2, 1, 32>}, {pipeline_mode = #tpu.pipeline_mode<synchronous>, transform_indices = @transform_16, window_bounds = array<i64: 2, 1, 32>}, {pipeline_mode = #tpu.pipeline_mode<synchronous>, transform_indices = @transform_17, window_bounds = array<i64: 2, 3, 32, 64>}, {pipeline_mode = #tpu.pipeline_mode<synchronous>, transform_indices = @transform_18, window_bounds = array<i64: 2, 1, 64>}, {pipeline_mode = #tpu.pipeline_mode<synchronous>, transform_indices = @transform_19, window_bounds = array<i64: 2, 3, 64, 32>}, {pipeline_mode = #tpu.pipeline_mode<synchronous>, transform_indices = @transform_20, window_bounds = array<i64: 2, 1, 32>}, {pipeline_mode = #tpu.pipeline_mode<synchronous>, transform_indices = @transform_21, window_bounds = array<i64: 2, 1, 32>}, {pipeline_mode = #tpu.pipeline_mode<synchronous>, transform_indices = @transform_22, window_bounds = array<i64: 2, 1, 32>}, {pipeline_mode = #tpu.pipeline_mode<synchronous>, transform_indices = @transform_23, window_bounds = array<i64: 1, 32>}, {pipeline_mode = #tpu.pipeline_mode<synchronous>, transform_indices = @transform_24, window_bounds = array<i64: 1, 1>}, {transform_indices = @transform_25, window_bounds = array<i64: 2, 1, 16>}]} {
    %c0 = arith.constant 0 : index
    %c0_0 = arith.constant 0 : index
    %c0_1 = arith.constant 0 : index
    %0 = vector.load %arg1[%c0, %c0_0, %c0_1] : memref<2x16x32xf32, #tpu.memory_space<vmem>>, vector<2x16x32xf32>
    %c0_2 = arith.constant 0 : index
    %c0_3 = arith.constant 0 : index
    %c0_4 = arith.constant 0 : index
    %1 = vector.load %arg3[%c0_2, %c0_3, %c0_4] : memref<2x16x1xf32, #tpu.memory_space<vmem>>, vector<2x16x1xf32>
    %2 = tpu.iota {dimensions = array<i32: 0>} : vector<16x16xi32>
    %3 = tpu.iota {dimensions = array<i32: 1>} : vector<16x16xi32>
    %4 = arith.cmpi sle, %3, %2 : vector<16x16xi32>
    %cst = arith.constant 0.000000e+00 : f32
    %cst_5 = arith.constant -1.000000e+04 : f32
    %5 = vector.broadcast %cst : f32 to vector<16x16xf32>
    %6 = vector.broadcast %cst_5 : f32 to vector<16x16xf32>
    %7 = arith.select %4, %5, %6 : vector<16x16xi1>, vector<16x16xf32>
    %8 = vector.shape_cast %7 : vector<16x16xf32> to vector<1x16x16xf32>
    %c0_6 = arith.constant 0 : index
    %c0_7 = arith.constant 0 : index
    %c0_8 = arith.constant 0 : index
    %9 = vector.load %arg5[%c0_6, %c0_7, %c0_8] : memref<2x16x8xf32, #tpu.memory_space<vmem>>, vector<2x16x8xf32>
    %c0_9 = arith.constant 0 : index
    %c0_10 = arith.constant 0 : index
    %10 = vector.load %arg6[%c0_9, %c0_10] : memref<8x32xf32, #tpu.memory_space<vmem>>, vector<8x32xf32>
    %11 = vector.shape_cast %9 : vector<2x16x8xf32> to vector<32x8xf32>
    %cst_11 = arith.constant dense<0.000000e+00> : vector<32x32xf32>
    %12 = tpu.matmul %11, %10, %cst_11 {dimension_numbers = #tpu.dot_dimension_numbers<[1], [0], [0], [1], [0, 0, 1, 1], [], []>} : vector<32x8xf32>, vector<8x32xf32>, vector<32x32xf32> -> vector<32x32xf32>
    %13 = vector.shape_cast %12 : vector<32x32xf32> to vector<2x16x32xf32>
    %14 = arith.addf %0, %13 : vector<2x16x32xf32>
    %c0_12 = arith.constant 0 : index
    %c0_13 = arith.constant 0 : index
    %15 = vector.load %arg7[%c0_12, %c0_13] : memref<1x32xf32, #tpu.memory_space<vmem>>, vector<1x32xf32>
    %16 = vector.shape_cast %15 : vector<1x32xf32> to vector<1x1x32xf32>
    %17 = vector.broadcast %16 : vector<1x1x32xf32> to vector<2x16x32xf32>
    %18 = arith.addf %14, %17 : vector<2x16x32xf32>
    %c0_14 = arith.constant 0 : index
    %c0_15 = arith.constant 0 : index
    %c0_16 = arith.constant 0 : index
    %19 = vector.load %arg2[%c0_14, %c0_15, %c0_16] : memref<2x16x1xf32, #tpu.memory_space<vmem>>, vector<2x16x1xf32>
    %c0_17 = arith.constant 0 : index
    %c0_18 = arith.constant 0 : index
    %c0_19 = arith.constant 0 : index
    %20 = vector.load %arg8[%c0_17, %c0_18, %c0_19] : memref<3x1x32xf32, #tpu.memory_space<vmem>>, vector<3x1x32xf32>
    %c0_20 = arith.constant 0 : index
    %c0_21 = arith.constant 0 : index
    %21 = vector.load %arg9[%c0_20, %c0_21] : memref<1x32xf32, #tpu.memory_space<vmem>>, vector<1x32xf32>
    %cst_22 = arith.constant 0.000000e+00 : f32
    %22 = vector.broadcast %cst_22 : f32 to vector<2x1x1xf32>
    %23 = vector.extract_strided_slice %19 {offsets = [0, 0, 0], sizes = [2, 15, 1], strides = [1, 1, 1]} : vector<2x16x1xf32> to vector<2x15x1xf32>
    %24 = tpu.concatenate %22, %23 in 1 : vector<2x1x1xf32>, vector<2x15x1xf32> -> vector<2x16x1xf32>
    %25 = vector.extract_strided_slice %19 {offsets = [0, 1, 0], sizes = [2, 15, 1], strides = [1, 1, 1]} : vector<2x16x1xf32> to vector<2x15x1xf32>
    %26 = tpu.concatenate %25, %22 in 1 : vector<2x15x1xf32>, vector<2x1x1xf32> -> vector<2x16x1xf32>
    %27 = vector.extract_strided_slice %20 {offsets = [0, 0, 0], sizes = [1, 1, 32], strides = [1, 1, 1]} : vector<3x1x32xf32> to vector<1x1x32xf32>
    %28 = vector.shape_cast %27 : vector<1x1x32xf32> to vector<1x32xf32>
    %29 = vector.shape_cast %28 : vector<1x32xf32> to vector<1x1x32xf32>
    %30 = vector.broadcast %24 : vector<2x16x1xf32> to vector<2x16x32xf32>
    %31 = vector.broadcast %29 : vector<1x1x32xf32> to vector<2x16x32xf32>
    %32 = arith.mulf %30, %31 : vector<2x16x32xf32>
    %33 = vector.extract_strided_slice %20 {offsets = [1, 0, 0], sizes = [1, 1, 32], strides = [1, 1, 1]} : vector<3x1x32xf32> to vector<1x1x32xf32>
    %34 = vector.shape_cast %33 : vector<1x1x32xf32> to vector<1x32xf32>
    %35 = vector.shape_cast %34 : vector<1x32xf32> to vector<1x1x32xf32>
    %36 = vector.broadcast %19 : vector<2x16x1xf32> to vector<2x16x32xf32>
    %37 = vector.broadcast %35 : vector<1x1x32xf32> to vector<2x16x32xf32>
    %38 = arith.mulf %36, %37 : vector<2x16x32xf32>
    %39 = arith.addf %32, %38 : vector<2x16x32xf32>
    %40 = vector.extract_strided_slice %20 {offsets = [2, 0, 0], sizes = [1, 1, 32], strides = [1, 1, 1]} : vector<3x1x32xf32> to vector<1x1x32xf32>
    %41 = vector.shape_cast %40 : vector<1x1x32xf32> to vector<1x32xf32>
    %42 = vector.shape_cast %41 : vector<1x32xf32> to vector<1x1x32xf32>
    %43 = vector.broadcast %26 : vector<2x16x1xf32> to vector<2x16x32xf32>
    %44 = vector.broadcast %42 : vector<1x1x32xf32> to vector<2x16x32xf32>
    %45 = arith.mulf %43, %44 : vector<2x16x32xf32>
    %46 = arith.addf %39, %45 : vector<2x16x32xf32>
    %47 = vector.shape_cast %21 : vector<1x32xf32> to vector<1x1x32xf32>
    %48 = vector.broadcast %47 : vector<1x1x32xf32> to vector<2x16x32xf32>
    %49 = arith.addf %46, %48 : vector<2x16x32xf32>
    %50 = arith.addf %18, %49 : vector<2x16x32xf32>
    %c0_23 = arith.constant 0 : index
    %c0_24 = arith.constant 0 : index
    %c0_25 = arith.constant 0 : index
    %51 = vector.load %arg10[%c0_23, %c0_24, %c0_25] : memref<3x32x32xf32, #tpu.memory_space<vmem>>, vector<3x32x32xf32>
    %c0_26 = arith.constant 0 : index
    %c0_27 = arith.constant 0 : index
    %52 = vector.load %arg11[%c0_26, %c0_27] : memref<1x32xf32, #tpu.memory_space<vmem>>, vector<1x32xf32>
    %cst_28 = arith.constant 0.000000e+00 : f32
    %53 = vector.broadcast %cst_28 : f32 to vector<2x1x32xf32>
    %54 = vector.extract_strided_slice %50 {offsets = [0, 0, 0], sizes = [2, 15, 32], strides = [1, 1, 1]} : vector<2x16x32xf32> to vector<2x15x32xf32>
    %55 = tpu.concatenate %53, %54 in 1 : vector<2x1x32xf32>, vector<2x15x32xf32> -> vector<2x16x32xf32>
    %56 = vector.extract_strided_slice %50 {offsets = [0, 1, 0], sizes = [2, 15, 32], strides = [1, 1, 1]} : vector<2x16x32xf32> to vector<2x15x32xf32>
    %57 = tpu.concatenate %56, %53 in 1 : vector<2x15x32xf32>, vector<2x1x32xf32> -> vector<2x16x32xf32>
    %58 = vector.extract_strided_slice %51 {offsets = [0, 0, 0], sizes = [1, 32, 32], strides = [1, 1, 1]} : vector<3x32x32xf32> to vector<1x32x32xf32>
    %59 = vector.shape_cast %58 : vector<1x32x32xf32> to vector<32x32xf32>
    %60 = vector.shape_cast %55 : vector<2x16x32xf32> to vector<32x32xf32>
    %cst_29 = arith.constant dense<0.000000e+00> : vector<32x32xf32>
    %61 = tpu.matmul %60, %59, %cst_29 {dimension_numbers = #tpu.dot_dimension_numbers<[1], [0], [0], [1], [0, 0, 1, 1], [], []>} : vector<32x32xf32>, vector<32x32xf32>, vector<32x32xf32> -> vector<32x32xf32>
    %62 = vector.shape_cast %61 : vector<32x32xf32> to vector<2x16x32xf32>
    %63 = vector.extract_strided_slice %51 {offsets = [1, 0, 0], sizes = [1, 32, 32], strides = [1, 1, 1]} : vector<3x32x32xf32> to vector<1x32x32xf32>
    %64 = vector.shape_cast %63 : vector<1x32x32xf32> to vector<32x32xf32>
    %65 = vector.shape_cast %50 : vector<2x16x32xf32> to vector<32x32xf32>
    %cst_30 = arith.constant dense<0.000000e+00> : vector<32x32xf32>
    %66 = tpu.matmul %65, %64, %cst_30 {dimension_numbers = #tpu.dot_dimension_numbers<[1], [0], [0], [1], [0, 0, 1, 1], [], []>} : vector<32x32xf32>, vector<32x32xf32>, vector<32x32xf32> -> vector<32x32xf32>
    %67 = vector.shape_cast %66 : vector<32x32xf32> to vector<2x16x32xf32>
    %68 = arith.addf %62, %67 : vector<2x16x32xf32>
    %69 = vector.extract_strided_slice %51 {offsets = [2, 0, 0], sizes = [1, 32, 32], strides = [1, 1, 1]} : vector<3x32x32xf32> to vector<1x32x32xf32>
    %70 = vector.shape_cast %69 : vector<1x32x32xf32> to vector<32x32xf32>
    %71 = vector.shape_cast %57 : vector<2x16x32xf32> to vector<32x32xf32>
    %cst_31 = arith.constant dense<0.000000e+00> : vector<32x32xf32>
    %72 = tpu.matmul %71, %70, %cst_31 {dimension_numbers = #tpu.dot_dimension_numbers<[1], [0], [0], [1], [0, 0, 1, 1], [], []>} : vector<32x32xf32>, vector<32x32xf32>, vector<32x32xf32> -> vector<32x32xf32>
    %73 = vector.shape_cast %72 : vector<32x32xf32> to vector<2x16x32xf32>
    %74 = arith.addf %68, %73 : vector<2x16x32xf32>
    %75 = vector.shape_cast %52 : vector<1x32xf32> to vector<1x1x32xf32>
    %76 = vector.broadcast %75 : vector<1x1x32xf32> to vector<2x16x32xf32>
    %77 = arith.addf %74, %76 : vector<2x16x32xf32>
    %78 = vector.broadcast %1 : vector<2x16x1xf32> to vector<2x16x32xf32>
    %79 = arith.mulf %77, %78 : vector<2x16x32xf32>
    %80 = vector.broadcast %1 : vector<2x16x1xf32> to vector<2x16x32xf32>
    %81 = arith.mulf %79, %80 : vector<2x16x32xf32>
    %c0_i32 = arith.constant 0 : i32
    %c2_i32 = arith.constant 2 : i32
    %82 = arith.addi %c0_i32, %c2_i32 : i32
    %c1_i32 = arith.constant 1 : i32
    %83 = scf.for %arg27 = %c0_i32 to %82 step %c1_i32 iter_args(%arg28 = %81) -> (vector<2x16x32xf32>)  : i32 {
      %97 = arith.index_cast %arg27 : i32 to index
      %c0_44 = arith.constant 0 : index
      %c0_45 = arith.constant 0 : index
      %98 = vector.load %arg12[%97, %c0_44, %c0_45] : memref<2x32x96xf32, #tpu.memory_space<vmem>>, vector<1x32x96xf32>
      %99 = vector.shape_cast %98 : vector<1x32x96xf32> to vector<32x96xf32>
      %100 = arith.index_cast %arg27 : i32 to index
      %c0_46 = arith.constant 0 : index
      %c0_47 = arith.constant 0 : index
      %101 = vector.load %arg13[%100, %c0_46, %c0_47] : memref<2x1x96xf32, #tpu.memory_space<vmem>>, vector<1x1x96xf32>
      %102 = vector.shape_cast %101 : vector<1x1x96xf32> to vector<1x96xf32>
      %103 = arith.index_cast %arg27 : i32 to index
      %c0_48 = arith.constant 0 : index
      %c0_49 = arith.constant 0 : index
      %104 = vector.load %arg14[%103, %c0_48, %c0_49] : memref<2x32x32xf32, #tpu.memory_space<vmem>>, vector<1x32x32xf32>
      %105 = vector.shape_cast %104 : vector<1x32x32xf32> to vector<32x32xf32>
      %106 = arith.index_cast %arg27 : i32 to index
      %c0_50 = arith.constant 0 : index
      %c0_51 = arith.constant 0 : index
      %107 = vector.load %arg15[%106, %c0_50, %c0_51] : memref<2x1x32xf32, #tpu.memory_space<vmem>>, vector<1x1x32xf32>
      %108 = vector.shape_cast %107 : vector<1x1x32xf32> to vector<1x32xf32>
      %109 = vector.shape_cast %arg28 : vector<2x16x32xf32> to vector<32x32xf32>
      %cst_52 = arith.constant dense<0.000000e+00> : vector<32x96xf32>
      %110 = tpu.matmul %109, %99, %cst_52 {dimension_numbers = #tpu.dot_dimension_numbers<[1], [0], [0], [1], [0, 0, 1, 1], [], []>} : vector<32x32xf32>, vector<32x96xf32>, vector<32x96xf32> -> vector<32x96xf32>
      %111 = vector.shape_cast %110 : vector<32x96xf32> to vector<2x16x96xf32>
      %112 = vector.shape_cast %102 : vector<1x96xf32> to vector<1x1x96xf32>
      %113 = vector.broadcast %112 : vector<1x1x96xf32> to vector<2x16x96xf32>
      %114 = arith.addf %111, %113 : vector<2x16x96xf32>
      %115 = vector.extract_strided_slice %114 {offsets = [0, 0, 0], sizes = [2, 16, 16], strides = [1, 1, 1]} : vector<2x16x96xf32> to vector<2x16x16xf32>
      %116 = vector.extract_strided_slice %114 {offsets = [0, 0, 16], sizes = [2, 16, 16], strides = [1, 1, 1]} : vector<2x16x96xf32> to vector<2x16x16xf32>
      %117 = tpu.concatenate %115, %116 in 0 : vector<2x16x16xf32>, vector<2x16x16xf32> -> vector<4x16x16xf32>
      %cst_53 = arith.constant 2.500000e-01 : f32
      %118 = vector.broadcast %cst_53 : f32 to vector<4x16x16xf32>
      %119 = arith.mulf %117, %118 : vector<4x16x16xf32>
      %120 = vector.extract_strided_slice %114 {offsets = [0, 0, 32], sizes = [2, 16, 16], strides = [1, 1, 1]} : vector<2x16x96xf32> to vector<2x16x16xf32>
      %121 = vector.extract_strided_slice %114 {offsets = [0, 0, 48], sizes = [2, 16, 16], strides = [1, 1, 1]} : vector<2x16x96xf32> to vector<2x16x16xf32>
      %122 = tpu.concatenate %120, %121 in 0 : vector<2x16x16xf32>, vector<2x16x16xf32> -> vector<4x16x16xf32>
      %123 = vector.extract_strided_slice %114 {offsets = [0, 0, 64], sizes = [2, 16, 16], strides = [1, 1, 1]} : vector<2x16x96xf32> to vector<2x16x16xf32>
      %124 = vector.extract_strided_slice %114 {offsets = [0, 0, 80], sizes = [2, 16, 16], strides = [1, 1, 1]} : vector<2x16x96xf32> to vector<2x16x16xf32>
      %125 = tpu.concatenate %123, %124 in 0 : vector<2x16x16xf32>, vector<2x16x16xf32> -> vector<4x16x16xf32>
      "tpu.trace_start"() <{level = 10 : i32, message = "btd,bsd->bts"}> : () -> ()
      %cst_54 = arith.constant dense<0.000000e+00> : vector<4x16x16xf32>
      %126 = tpu.matmul %119, %122, %cst_54 {dimension_numbers = #tpu.dot_dimension_numbers<[2], [2], [1], [1], [0, 0, 0, 1, 1, 1], [0], [0]>} : vector<4x16x16xf32>, vector<4x16x16xf32>, vector<4x16x16xf32> -> vector<4x16x16xf32>
      "tpu.trace_stop"() : () -> ()
      %127 = vector.broadcast %8 : vector<1x16x16xf32> to vector<4x16x16xf32>
      %128 = arith.addf %126, %127 : vector<4x16x16xf32>
      %cst_55 = arith.constant dense<0xFF800000> : vector<4x16xf32>
      %129 = vector.multi_reduction <maximumf>, %128, %cst_55 [2] : vector<4x16x16xf32> to vector<4x16xf32>
      %130 = vector.shape_cast %129 : vector<4x16xf32> to vector<4x16x1xf32>
      %131 = vector.broadcast %130 : vector<4x16x1xf32> to vector<4x16x16xf32>
      %132 = arith.subf %128, %131 : vector<4x16x16xf32>
      %133 = math.exp %132 : vector<4x16x16xf32>
      %cst_56 = arith.constant dense<0.000000e+00> : vector<4x16xf32>
      %134 = vector.multi_reduction <add>, %133, %cst_56 [2] : vector<4x16x16xf32> to vector<4x16xf32>
      %135 = vector.shape_cast %134 : vector<4x16xf32> to vector<4x16x1xf32>
      %136 = vector.broadcast %135 : vector<4x16x1xf32> to vector<4x16x16xf32>
      %137 = arith.divf %133, %136 : vector<4x16x16xf32>
      "tpu.trace_start"() <{level = 10 : i32, message = "bts,bsd->btd"}> : () -> ()
      %cst_57 = arith.constant dense<0.000000e+00> : vector<4x16x16xf32>
      %138 = tpu.matmul %137, %125, %cst_57 {dimension_numbers = #tpu.dot_dimension_numbers<[2], [1], [1], [2], [0, 0, 0, 1, 1, 2], [0], [0]>} : vector<4x16x16xf32>, vector<4x16x16xf32>, vector<4x16x16xf32> -> vector<4x16x16xf32>
      "tpu.trace_stop"() : () -> ()
      %139 = vector.extract_strided_slice %138 {offsets = [0, 0, 0], sizes = [2, 16, 16], strides = [1, 1, 1]} : vector<4x16x16xf32> to vector<2x16x16xf32>
      %140 = vector.extract_strided_slice %138 {offsets = [2, 0, 0], sizes = [2, 16, 16], strides = [1, 1, 1]} : vector<4x16x16xf32> to vector<2x16x16xf32>
      %141 = tpu.concatenate %139, %140 in 2 : vector<2x16x16xf32>, vector<2x16x16xf32> -> vector<2x16x32xf32>
      %142 = vector.shape_cast %141 : vector<2x16x32xf32> to vector<32x32xf32>
      %cst_58 = arith.constant dense<0.000000e+00> : vector<32x32xf32>
      %143 = tpu.matmul %142, %105, %cst_58 {dimension_numbers = #tpu.dot_dimension_numbers<[1], [0], [0], [1], [0, 0, 1, 1], [], []>} : vector<32x32xf32>, vector<32x32xf32>, vector<32x32xf32> -> vector<32x32xf32>
      %144 = vector.shape_cast %143 : vector<32x32xf32> to vector<2x16x32xf32>
      %145 = vector.shape_cast %108 : vector<1x32xf32> to vector<1x1x32xf32>
      %146 = vector.broadcast %145 : vector<1x1x32xf32> to vector<2x16x32xf32>
      %147 = arith.addf %144, %146 : vector<2x16x32xf32>
      %148 = arith.addf %arg28, %147 : vector<2x16x32xf32>
      %149 = arith.index_cast %arg27 : i32 to index
      %c0_59 = arith.constant 0 : index
      %c0_60 = arith.constant 0 : index
      %150 = vector.load %arg16[%149, %c0_59, %c0_60] : memref<2x1x32xf32, #tpu.memory_space<vmem>>, vector<1x1x32xf32>
      %151 = vector.shape_cast %150 : vector<1x1x32xf32> to vector<1x32xf32>
      %152 = arith.index_cast %arg27 : i32 to index
      %c0_61 = arith.constant 0 : index
      %c0_62 = arith.constant 0 : index
      %153 = vector.load %arg17[%152, %c0_61, %c0_62] : memref<2x1x32xf32, #tpu.memory_space<vmem>>, vector<1x1x32xf32>
      %154 = vector.shape_cast %153 : vector<1x1x32xf32> to vector<1x32xf32>
      %cst_63 = arith.constant dense<0.000000e+00> : vector<2x16xf32>
      %155 = vector.multi_reduction <add>, %148, %cst_63 [2] : vector<2x16x32xf32> to vector<2x16xf32>
      %156 = vector.shape_cast %155 : vector<2x16xf32> to vector<2x16x1xf32>
      %cst_64 = arith.constant 3.200000e+01 : f32
      %157 = vector.broadcast %cst_64 : f32 to vector<2x16x1xf32>
      %158 = arith.divf %156, %157 : vector<2x16x1xf32>
      %159 = vector.broadcast %158 : vector<2x16x1xf32> to vector<2x16x32xf32>
      %160 = arith.subf %148, %159 : vector<2x16x32xf32>
      %161 = arith.mulf %160, %160 : vector<2x16x32xf32>
      %cst_65 = arith.constant dense<0.000000e+00> : vector<2x16xf32>
      %162 = vector.multi_reduction <add>, %161, %cst_65 [2] : vector<2x16x32xf32> to vector<2x16xf32>
      %163 = vector.shape_cast %162 : vector<2x16xf32> to vector<2x16x1xf32>
      %cst_66 = arith.constant 3.200000e+01 : f32
      %164 = vector.broadcast %cst_66 : f32 to vector<2x16x1xf32>
      %165 = arith.divf %163, %164 : vector<2x16x1xf32>
      %166 = vector.broadcast %158 : vector<2x16x1xf32> to vector<2x16x32xf32>
      %167 = arith.subf %148, %166 : vector<2x16x32xf32>
      %cst_67 = arith.constant 9.99999974E-6 : f32
      %168 = vector.broadcast %cst_67 : f32 to vector<2x16x1xf32>
      %169 = arith.addf %165, %168 : vector<2x16x1xf32>
      %170 = math.rsqrt %169 : vector<2x16x1xf32>
      %171 = vector.broadcast %170 : vector<2x16x1xf32> to vector<2x16x32xf32>
      %172 = arith.mulf %167, %171 : vector<2x16x32xf32>
      %173 = vector.shape_cast %151 : vector<1x32xf32> to vector<1x1x32xf32>
      %174 = vector.broadcast %173 : vector<1x1x32xf32> to vector<2x16x32xf32>
      %175 = arith.mulf %172, %174 : vector<2x16x32xf32>
      %176 = vector.shape_cast %154 : vector<1x32xf32> to vector<1x1x32xf32>
      %177 = vector.broadcast %176 : vector<1x1x32xf32> to vector<2x16x32xf32>
      %178 = arith.addf %175, %177 : vector<2x16x32xf32>
      %179 = arith.index_cast %arg27 : i32 to index
      %c0_68 = arith.constant 0 : index
      %c0_69 = arith.constant 0 : index
      %c0_70 = arith.constant 0 : index
      %180 = vector.load %arg18[%179, %c0_68, %c0_69, %c0_70] : memref<2x3x32x64xf32, #tpu.memory_space<vmem>>, vector<1x3x32x64xf32>
      %181 = vector.shape_cast %180 : vector<1x3x32x64xf32> to vector<3x32x64xf32>
      %182 = arith.index_cast %arg27 : i32 to index
      %c0_71 = arith.constant 0 : index
      %c0_72 = arith.constant 0 : index
      %183 = vector.load %arg19[%182, %c0_71, %c0_72] : memref<2x1x64xf32, #tpu.memory_space<vmem>>, vector<1x1x64xf32>
      %184 = vector.shape_cast %183 : vector<1x1x64xf32> to vector<1x64xf32>
      %185 = arith.index_cast %arg27 : i32 to index
      %c0_73 = arith.constant 0 : index
      %c0_74 = arith.constant 0 : index
      %c0_75 = arith.constant 0 : index
      %186 = vector.load %arg20[%185, %c0_73, %c0_74, %c0_75] : memref<2x3x64x32xf32, #tpu.memory_space<vmem>>, vector<1x3x64x32xf32>
      %187 = vector.shape_cast %186 : vector<1x3x64x32xf32> to vector<3x64x32xf32>
      %188 = arith.index_cast %arg27 : i32 to index
      %c0_76 = arith.constant 0 : index
      %c0_77 = arith.constant 0 : index
      %189 = vector.load %arg21[%188, %c0_76, %c0_77] : memref<2x1x32xf32, #tpu.memory_space<vmem>>, vector<1x1x32xf32>
      %190 = vector.shape_cast %189 : vector<1x1x32xf32> to vector<1x32xf32>
      %191 = vector.broadcast %1 : vector<2x16x1xf32> to vector<2x16x32xf32>
      %192 = arith.mulf %178, %191 : vector<2x16x32xf32>
      %cst_78 = arith.constant 0.000000e+00 : f32
      %193 = vector.broadcast %cst_78 : f32 to vector<2x1x32xf32>
      %cst_79 = arith.constant 0.000000e+00 : f32
      %194 = vector.broadcast %cst_79 : f32 to vector<2x2x32xf32>
      %195 = vector.extract_strided_slice %192 {offsets = [0, 0, 0], sizes = [2, 15, 32], strides = [1, 1, 1]} : vector<2x16x32xf32> to vector<2x15x32xf32>
      %196 = tpu.concatenate %193, %195 in 1 : vector<2x1x32xf32>, vector<2x15x32xf32> -> vector<2x16x32xf32>
      %197 = vector.extract_strided_slice %192 {offsets = [0, 0, 0], sizes = [2, 14, 32], strides = [1, 1, 1]} : vector<2x16x32xf32> to vector<2x14x32xf32>
      %198 = tpu.concatenate %194, %197 in 1 : vector<2x2x32xf32>, vector<2x14x32xf32> -> vector<2x16x32xf32>
      %199 = vector.extract_strided_slice %181 {offsets = [0, 0, 0], sizes = [1, 32, 64], strides = [1, 1, 1]} : vector<3x32x64xf32> to vector<1x32x64xf32>
      %200 = vector.shape_cast %199 : vector<1x32x64xf32> to vector<32x64xf32>
      %201 = vector.shape_cast %198 : vector<2x16x32xf32> to vector<32x32xf32>
      %cst_80 = arith.constant dense<0.000000e+00> : vector<32x64xf32>
      %202 = tpu.matmul %201, %200, %cst_80 {dimension_numbers = #tpu.dot_dimension_numbers<[1], [0], [0], [1], [0, 0, 1, 1], [], []>} : vector<32x32xf32>, vector<32x64xf32>, vector<32x64xf32> -> vector<32x64xf32>
      %203 = vector.shape_cast %202 : vector<32x64xf32> to vector<2x16x64xf32>
      %204 = vector.extract_strided_slice %181 {offsets = [1, 0, 0], sizes = [1, 32, 64], strides = [1, 1, 1]} : vector<3x32x64xf32> to vector<1x32x64xf32>
      %205 = vector.shape_cast %204 : vector<1x32x64xf32> to vector<32x64xf32>
      %206 = vector.shape_cast %196 : vector<2x16x32xf32> to vector<32x32xf32>
      %cst_81 = arith.constant dense<0.000000e+00> : vector<32x64xf32>
      %207 = tpu.matmul %206, %205, %cst_81 {dimension_numbers = #tpu.dot_dimension_numbers<[1], [0], [0], [1], [0, 0, 1, 1], [], []>} : vector<32x32xf32>, vector<32x64xf32>, vector<32x64xf32> -> vector<32x64xf32>
      %208 = vector.shape_cast %207 : vector<32x64xf32> to vector<2x16x64xf32>
      %209 = arith.addf %203, %208 : vector<2x16x64xf32>
      %210 = vector.extract_strided_slice %181 {offsets = [2, 0, 0], sizes = [1, 32, 64], strides = [1, 1, 1]} : vector<3x32x64xf32> to vector<1x32x64xf32>
      %211 = vector.shape_cast %210 : vector<1x32x64xf32> to vector<32x64xf32>
      %212 = vector.shape_cast %192 : vector<2x16x32xf32> to vector<32x32xf32>
      %cst_82 = arith.constant dense<0.000000e+00> : vector<32x64xf32>
      %213 = tpu.matmul %212, %211, %cst_82 {dimension_numbers = #tpu.dot_dimension_numbers<[1], [0], [0], [1], [0, 0, 1, 1], [], []>} : vector<32x32xf32>, vector<32x64xf32>, vector<32x64xf32> -> vector<32x64xf32>
      %214 = vector.shape_cast %213 : vector<32x64xf32> to vector<2x16x64xf32>
      %215 = arith.addf %209, %214 : vector<2x16x64xf32>
      %216 = vector.shape_cast %184 : vector<1x64xf32> to vector<1x1x64xf32>
      %217 = vector.broadcast %216 : vector<1x1x64xf32> to vector<2x16x64xf32>
      %218 = arith.addf %215, %217 : vector<2x16x64xf32>
      %cst_83 = arith.constant 0.000000e+00 : f32
      %219 = vector.broadcast %cst_83 : f32 to vector<2x16x64xf32>
      %220 = arith.maximumf %218, %219 : vector<2x16x64xf32>
      %221 = vector.broadcast %1 : vector<2x16x1xf32> to vector<2x16x64xf32>
      %222 = arith.mulf %220, %221 : vector<2x16x64xf32>
      %cst_84 = arith.constant 0.000000e+00 : f32
      %223 = vector.broadcast %cst_84 : f32 to vector<2x1x64xf32>
      %cst_85 = arith.constant 0.000000e+00 : f32
      %224 = vector.broadcast %cst_85 : f32 to vector<2x2x64xf32>
      %225 = vector.extract_strided_slice %222 {offsets = [0, 0, 0], sizes = [2, 15, 64], strides = [1, 1, 1]} : vector<2x16x64xf32> to vector<2x15x64xf32>
      %226 = tpu.concatenate %223, %225 in 1 : vector<2x1x64xf32>, vector<2x15x64xf32> -> vector<2x16x64xf32>
      %227 = vector.extract_strided_slice %222 {offsets = [0, 0, 0], sizes = [2, 14, 64], strides = [1, 1, 1]} : vector<2x16x64xf32> to vector<2x14x64xf32>
      %228 = tpu.concatenate %224, %227 in 1 : vector<2x2x64xf32>, vector<2x14x64xf32> -> vector<2x16x64xf32>
      %229 = vector.extract_strided_slice %187 {offsets = [0, 0, 0], sizes = [1, 64, 32], strides = [1, 1, 1]} : vector<3x64x32xf32> to vector<1x64x32xf32>
      %230 = vector.shape_cast %229 : vector<1x64x32xf32> to vector<64x32xf32>
      %231 = vector.shape_cast %228 : vector<2x16x64xf32> to vector<32x64xf32>
      %cst_86 = arith.constant dense<0.000000e+00> : vector<32x32xf32>
      %232 = tpu.matmul %231, %230, %cst_86 {dimension_numbers = #tpu.dot_dimension_numbers<[1], [0], [0], [1], [0, 0, 1, 1], [], []>} : vector<32x64xf32>, vector<64x32xf32>, vector<32x32xf32> -> vector<32x32xf32>
      %233 = vector.shape_cast %232 : vector<32x32xf32> to vector<2x16x32xf32>
      %234 = vector.extract_strided_slice %187 {offsets = [1, 0, 0], sizes = [1, 64, 32], strides = [1, 1, 1]} : vector<3x64x32xf32> to vector<1x64x32xf32>
      %235 = vector.shape_cast %234 : vector<1x64x32xf32> to vector<64x32xf32>
      %236 = vector.shape_cast %226 : vector<2x16x64xf32> to vector<32x64xf32>
      %cst_87 = arith.constant dense<0.000000e+00> : vector<32x32xf32>
      %237 = tpu.matmul %236, %235, %cst_87 {dimension_numbers = #tpu.dot_dimension_numbers<[1], [0], [0], [1], [0, 0, 1, 1], [], []>} : vector<32x64xf32>, vector<64x32xf32>, vector<32x32xf32> -> vector<32x32xf32>
      %238 = vector.shape_cast %237 : vector<32x32xf32> to vector<2x16x32xf32>
      %239 = arith.addf %233, %238 : vector<2x16x32xf32>
      %240 = vector.extract_strided_slice %187 {offsets = [2, 0, 0], sizes = [1, 64, 32], strides = [1, 1, 1]} : vector<3x64x32xf32> to vector<1x64x32xf32>
      %241 = vector.shape_cast %240 : vector<1x64x32xf32> to vector<64x32xf32>
      %242 = vector.shape_cast %222 : vector<2x16x64xf32> to vector<32x64xf32>
      %cst_88 = arith.constant dense<0.000000e+00> : vector<32x32xf32>
      %243 = tpu.matmul %242, %241, %cst_88 {dimension_numbers = #tpu.dot_dimension_numbers<[1], [0], [0], [1], [0, 0, 1, 1], [], []>} : vector<32x64xf32>, vector<64x32xf32>, vector<32x32xf32> -> vector<32x32xf32>
      %244 = vector.shape_cast %243 : vector<32x32xf32> to vector<2x16x32xf32>
      %245 = arith.addf %239, %244 : vector<2x16x32xf32>
      %246 = vector.shape_cast %190 : vector<1x32xf32> to vector<1x1x32xf32>
      %247 = vector.broadcast %246 : vector<1x1x32xf32> to vector<2x16x32xf32>
      %248 = arith.addf %245, %247 : vector<2x16x32xf32>
      %249 = vector.broadcast %1 : vector<2x16x1xf32> to vector<2x16x32xf32>
      %250 = arith.mulf %248, %249 : vector<2x16x32xf32>
      %251 = arith.addf %178, %250 : vector<2x16x32xf32>
      %252 = arith.index_cast %arg27 : i32 to index
      %c0_89 = arith.constant 0 : index
      %c0_90 = arith.constant 0 : index
      %253 = vector.load %arg22[%252, %c0_89, %c0_90] : memref<2x1x32xf32, #tpu.memory_space<vmem>>, vector<1x1x32xf32>
      %254 = vector.shape_cast %253 : vector<1x1x32xf32> to vector<1x32xf32>
      %255 = arith.index_cast %arg27 : i32 to index
      %c0_91 = arith.constant 0 : index
      %c0_92 = arith.constant 0 : index
      %256 = vector.load %arg23[%255, %c0_91, %c0_92] : memref<2x1x32xf32, #tpu.memory_space<vmem>>, vector<1x1x32xf32>
      %257 = vector.shape_cast %256 : vector<1x1x32xf32> to vector<1x32xf32>
      %cst_93 = arith.constant dense<0.000000e+00> : vector<2x16xf32>
      %258 = vector.multi_reduction <add>, %251, %cst_93 [2] : vector<2x16x32xf32> to vector<2x16xf32>
      %259 = vector.shape_cast %258 : vector<2x16xf32> to vector<2x16x1xf32>
      %cst_94 = arith.constant 3.200000e+01 : f32
      %260 = vector.broadcast %cst_94 : f32 to vector<2x16x1xf32>
      %261 = arith.divf %259, %260 : vector<2x16x1xf32>
      %262 = vector.broadcast %261 : vector<2x16x1xf32> to vector<2x16x32xf32>
      %263 = arith.subf %251, %262 : vector<2x16x32xf32>
      %264 = arith.mulf %263, %263 : vector<2x16x32xf32>
      %cst_95 = arith.constant dense<0.000000e+00> : vector<2x16xf32>
      %265 = vector.multi_reduction <add>, %264, %cst_95 [2] : vector<2x16x32xf32> to vector<2x16xf32>
      %266 = vector.shape_cast %265 : vector<2x16xf32> to vector<2x16x1xf32>
      %cst_96 = arith.constant 3.200000e+01 : f32
      %267 = vector.broadcast %cst_96 : f32 to vector<2x16x1xf32>
      %268 = arith.divf %266, %267 : vector<2x16x1xf32>
      %269 = vector.broadcast %261 : vector<2x16x1xf32> to vector<2x16x32xf32>
      %270 = arith.subf %251, %269 : vector<2x16x32xf32>
      %cst_97 = arith.constant 9.99999974E-6 : f32
      %271 = vector.broadcast %cst_97 : f32 to vector<2x16x1xf32>
      %272 = arith.addf %268, %271 : vector<2x16x1xf32>
      %273 = math.rsqrt %272 : vector<2x16x1xf32>
      %274 = vector.broadcast %273 : vector<2x16x1xf32> to vector<2x16x32xf32>
      %275 = arith.mulf %270, %274 : vector<2x16x32xf32>
      %276 = vector.shape_cast %254 : vector<1x32xf32> to vector<1x1x32xf32>
      %277 = vector.broadcast %276 : vector<1x1x32xf32> to vector<2x16x32xf32>
      %278 = arith.mulf %275, %277 : vector<2x16x32xf32>
      %279 = vector.shape_cast %257 : vector<1x32xf32> to vector<1x1x32xf32>
      %280 = vector.broadcast %279 : vector<1x1x32xf32> to vector<2x16x32xf32>
      %281 = arith.addf %278, %280 : vector<2x16x32xf32>
      scf.yield %281 : vector<2x16x32xf32>
    }
    %c2_i32_32 = arith.constant 2 : i32
    %84 = vector.broadcast %1 : vector<2x16x1xf32> to vector<2x16x32xf32>
    %85 = arith.mulf %83, %84 : vector<2x16x32xf32>
    %c0_33 = arith.constant 0 : index
    %c0_34 = arith.constant 0 : index
    %86 = vector.load %arg24[%c0_33, %c0_34] : memref<1x32xf32, #tpu.memory_space<vmem>>, vector<1x32xf32>
    %87 = vector.shape_cast %86 : vector<1x32xf32> to vector<1x1x32xf32>
    %88 = vector.broadcast %87 : vector<1x1x32xf32> to vector<2x1x32xf32>
    %cst_35 = arith.constant dense<0.000000e+00> : vector<2x1x16xf32>
    %89 = tpu.matmul %88, %85, %cst_35 {dimension_numbers = #tpu.dot_dimension_numbers<[2], [2], [1], [1], [0, 0, 0, 1, 1, 1], [0], [0]>} : vector<2x1x32xf32>, vector<2x16x32xf32>, vector<2x1x16xf32> -> vector<2x1x16xf32>
    %c0_36 = arith.constant 0 : index
    %c0_37 = arith.constant 0 : index
    %90 = vector.load %arg25[%c0_36, %c0_37] : memref<1x1xf32, #tpu.memory_space<vmem>>, vector<1x1xf32>
    %91 = vector.shape_cast %90 : vector<1x1xf32> to vector<1x1x1xf32>
    %92 = vector.broadcast %91 : vector<1x1x1xf32> to vector<2x1x16xf32>
    %93 = arith.addf %89, %92 : vector<2x1x16xf32>
    %c0_38 = arith.constant 0 : index
    %c0_39 = arith.constant 0 : index
    %c0_40 = arith.constant 0 : index
    %94 = vector.load %arg4[%c0_38, %c0_39, %c0_40] : memref<2x1x16xf32, #tpu.memory_space<vmem>>, vector<2x1x16xf32>
    %95 = arith.mulf %93, %94 : vector<2x1x16xf32>
    %c0_41 = arith.constant 0 : index
    %c0_42 = arith.constant 0 : index
    %c0_43 = arith.constant 0 : index
    %96 = vector.load %arg26[%c0_41, %c0_42, %c0_43] : memref<2x1x16xf32, #tpu.memory_space<vmem>>, vector<2x1x16xf32>
    tpu.vector_store %arg26[%c0_41, %c0_42, %c0_43], %95 {strides = array<i32>} : memref<2x1x16xf32, #tpu.memory_space<vmem>>, vector<2x1x16xf32>,
    return
  }
  func.func @transform_0(%arg0: i32) -> (i32, i32, i32) {
    %c0_i32 = arith.constant 0 : i32
    %c0_i32_0 = arith.constant 0 : i32
    %c0_i32_1 = arith.constant 0 : i32
    return %arg0, %c0_i32, %c0_i32_0 : i32, i32, i32
  }
  func.func @transform_1(%arg0: i32) -> (i32, i32, i32) {
    %c0_i32 = arith.constant 0 : i32
    %c0_i32_0 = arith.constant 0 : i32
    %c0_i32_1 = arith.constant 0 : i32
    return %arg0, %c0_i32, %c0_i32_0 : i32, i32, i32
  }
  func.func @transform_2(%arg0: i32) -> (i32, i32, i32) {
    %c0_i32 = arith.constant 0 : i32
    %c0_i32_0 = arith.constant 0 : i32
    %c0_i32_1 = arith.constant 0 : i32
    return %arg0, %c0_i32, %c0_i32_0 : i32, i32, i32
  }
  func.func @transform_3(%arg0: i32) -> (i32, i32, i32) {
    %c0_i32 = arith.constant 0 : i32
    %c0_i32_0 = arith.constant 0 : i32
    %c0_i32_1 = arith.constant 0 : i32
    return %arg0, %c0_i32, %c0_i32_0 : i32, i32, i32
  }
  func.func @transform_4(%arg0: i32) -> (i32, i32, i32) {
    %c0_i32 = arith.constant 0 : i32
    %c0_i32_0 = arith.constant 0 : i32
    %c0_i32_1 = arith.constant 0 : i32
    return %arg0, %c0_i32, %c0_i32_0 : i32, i32, i32
  }
  func.func @transform_5(%arg0: i32) -> (i32, i32) {
    %c0_i32 = arith.constant 0 : i32
    %c0_i32_0 = arith.constant 0 : i32
    %c0_i32_1 = arith.constant 0 : i32
    return %c0_i32, %c0_i32_0 : i32, i32
  }
  func.func @transform_6(%arg0: i32) -> (i32, i32) {
    %c0_i32 = arith.constant 0 : i32
    %c0_i32_0 = arith.constant 0 : i32
    %c0_i32_1 = arith.constant 0 : i32
    return %c0_i32, %c0_i32_0 : i32, i32
  }
  func.func @transform_7(%arg0: i32) -> (i32, i32, i32) {
    %c0_i32 = arith.constant 0 : i32
    %c0_i32_0 = arith.constant 0 : i32
    %c0_i32_1 = arith.constant 0 : i32
    %c0_i32_2 = arith.constant 0 : i32
    return %c0_i32, %c0_i32_0, %c0_i32_1 : i32, i32, i32
  }
  func.func @transform_8(%arg0: i32) -> (i32, i32) {
    %c0_i32 = arith.constant 0 : i32
    %c0_i32_0 = arith.constant 0 : i32
    %c0_i32_1 = arith.constant 0 : i32
    return %c0_i32, %c0_i32_0 : i32, i32
  }
  func.func @transform_9(%arg0: i32) -> (i32, i32, i32) {
    %c0_i32 = arith.constant 0 : i32
    %c0_i32_0 = arith.constant 0 : i32
    %c0_i32_1 = arith.constant 0 : i32
    %c0_i32_2 = arith.constant 0 : i32
    return %c0_i32, %c0_i32_0, %c0_i32_1 : i32, i32, i32
  }
  func.func @transform_10(%arg0: i32) -> (i32, i32) {
    %c0_i32 = arith.constant 0 : i32
    %c0_i32_0 = arith.constant 0 : i32
    %c0_i32_1 = arith.constant 0 : i32
    return %c0_i32, %c0_i32_0 : i32, i32
  }
  func.func @transform_11(%arg0: i32) -> (i32, i32, i32) {
    %c0_i32 = arith.constant 0 : i32
    %c0_i32_0 = arith.constant 0 : i32
    %c0_i32_1 = arith.constant 0 : i32
    %c0_i32_2 = arith.constant 0 : i32
    return %c0_i32, %c0_i32_0, %c0_i32_1 : i32, i32, i32
  }
  func.func @transform_12(%arg0: i32) -> (i32, i32, i32) {
    %c0_i32 = arith.constant 0 : i32
    %c0_i32_0 = arith.constant 0 : i32
    %c0_i32_1 = arith.constant 0 : i32
    %c0_i32_2 = arith.constant 0 : i32
    return %c0_i32, %c0_i32_0, %c0_i32_1 : i32, i32, i32
  }
  func.func @transform_13(%arg0: i32) -> (i32, i32, i32) {
    %c0_i32 = arith.constant 0 : i32
    %c0_i32_0 = arith.constant 0 : i32
    %c0_i32_1 = arith.constant 0 : i32
    %c0_i32_2 = arith.constant 0 : i32
    return %c0_i32, %c0_i32_0, %c0_i32_1 : i32, i32, i32
  }
  func.func @transform_14(%arg0: i32) -> (i32, i32, i32) {
    %c0_i32 = arith.constant 0 : i32
    %c0_i32_0 = arith.constant 0 : i32
    %c0_i32_1 = arith.constant 0 : i32
    %c0_i32_2 = arith.constant 0 : i32
    return %c0_i32, %c0_i32_0, %c0_i32_1 : i32, i32, i32
  }
  func.func @transform_15(%arg0: i32) -> (i32, i32, i32) {
    %c0_i32 = arith.constant 0 : i32
    %c0_i32_0 = arith.constant 0 : i32
    %c0_i32_1 = arith.constant 0 : i32
    %c0_i32_2 = arith.constant 0 : i32
    return %c0_i32, %c0_i32_0, %c0_i32_1 : i32, i32, i32
  }
  func.func @transform_16(%arg0: i32) -> (i32, i32, i32) {
    %c0_i32 = arith.constant 0 : i32
    %c0_i32_0 = arith.constant 0 : i32
    %c0_i32_1 = arith.constant 0 : i32
    %c0_i32_2 = arith.constant 0 : i32
    return %c0_i32, %c0_i32_0, %c0_i32_1 : i32, i32, i32
  }
  func.func @transform_17(%arg0: i32) -> (i32, i32, i32, i32) {
    %c0_i32 = arith.constant 0 : i32
    %c0_i32_0 = arith.constant 0 : i32
    %c0_i32_1 = arith.constant 0 : i32
    %c0_i32_2 = arith.constant 0 : i32
    %c0_i32_3 = arith.constant 0 : i32
    return %c0_i32, %c0_i32_0, %c0_i32_1, %c0_i32_2 : i32, i32, i32, i32
  }
  func.func @transform_18(%arg0: i32) -> (i32, i32, i32) {
    %c0_i32 = arith.constant 0 : i32
    %c0_i32_0 = arith.constant 0 : i32
    %c0_i32_1 = arith.constant 0 : i32
    %c0_i32_2 = arith.constant 0 : i32
    return %c0_i32, %c0_i32_0, %c0_i32_1 : i32, i32, i32
  }
  func.func @transform_19(%arg0: i32) -> (i32, i32, i32, i32) {
    %c0_i32 = arith.constant 0 : i32
    %c0_i32_0 = arith.constant 0 : i32
    %c0_i32_1 = arith.constant 0 : i32
    %c0_i32_2 = arith.constant 0 : i32
    %c0_i32_3 = arith.constant 0 : i32
    return %c0_i32, %c0_i32_0, %c0_i32_1, %c0_i32_2 : i32, i32, i32, i32
  }
  func.func @transform_20(%arg0: i32) -> (i32, i32, i32) {
    %c0_i32 = arith.constant 0 : i32
    %c0_i32_0 = arith.constant 0 : i32
    %c0_i32_1 = arith.constant 0 : i32
    %c0_i32_2 = arith.constant 0 : i32
    return %c0_i32, %c0_i32_0, %c0_i32_1 : i32, i32, i32
  }
  func.func @transform_21(%arg0: i32) -> (i32, i32, i32) {
    %c0_i32 = arith.constant 0 : i32
    %c0_i32_0 = arith.constant 0 : i32
    %c0_i32_1 = arith.constant 0 : i32
    %c0_i32_2 = arith.constant 0 : i32
    return %c0_i32, %c0_i32_0, %c0_i32_1 : i32, i32, i32
  }
  func.func @transform_22(%arg0: i32) -> (i32, i32, i32) {
    %c0_i32 = arith.constant 0 : i32
    %c0_i32_0 = arith.constant 0 : i32
    %c0_i32_1 = arith.constant 0 : i32
    %c0_i32_2 = arith.constant 0 : i32
    return %c0_i32, %c0_i32_0, %c0_i32_1 : i32, i32, i32
  }
  func.func @transform_23(%arg0: i32) -> (i32, i32) {
    %c0_i32 = arith.constant 0 : i32
    %c0_i32_0 = arith.constant 0 : i32
    %c0_i32_1 = arith.constant 0 : i32
    return %c0_i32, %c0_i32_0 : i32, i32
  }
  func.func @transform_24(%arg0: i32) -> (i32, i32) {
    %c0_i32 = arith.constant 0 : i32
    %c0_i32_0 = arith.constant 0 : i32
    %c0_i32_1 = arith.constant 0 : i32
    return %c0_i32, %c0_i32_0 : i32, i32
  }
  func.func @transform_25(%arg0: i32) -> (i32, i32, i32) {
    %c0_i32 = arith.constant 0 : i32
    %c0_i32_0 = arith.constant 0 : i32
    %c0_i32_1 = arith.constant 0 : i32
    return %arg0, %c0_i32, %c0_i32_0 : i32, i32, i32
  }
}

</mosaic_0001>

<bundles_post_ra>
// kernel: tpu_custom_call.1
= control target key start
LH: loop header
LB: loop body
LE: loop exit
PB: predicated region body
PF: predicated region fallthrough
CT: control target
= control target key end

     0   :  { %s5542_s0 = inlined_call_operand.vmem [shape: f32[4,16,32], index: 0, kind: input, shape index: {}]   ;;  %s5543_s1 = inlined_call_operand.vmem [shape: f32[4,16,1], index: 1, kind: input, shape index: {}]   ;;  %s5544_s2 = inlined_call_operand.vmem [shape: f32[4,16,1], index: 2, kind: input, shape index: {}]   ;;  %s5545_s3 = inlined_call_operand.vmem [shape: f32[4,1,16], index: 3, kind: input, shape index: {}]   ;;  %s5546_s4 = inlined_call_operand.vmem [shape: f32[4,16,8], index: 4, kind: input, shape index: {}]   ;;  %s5547_s5 = inlined_call_operand.vmem [shape: f32[8,32], index: 5, kind: input, shape index: {}]   ;;  %s5548_s6 = inlined_call_operand.vmem [shape: f32[1,32], index: 6, kind: input, shape index: {}]   ;;  %s5549_s7 = inlined_call_operand.vmem [shape: f32[3,1,32], index: 7, kind: input, shape index: {}]   ;;  %s5550_s8 = inlined_call_operand.vmem [shape: f32[1,32], index: 8, kind: input, shape index: {}]   ;;  %s5551_s9 = inlined_call_operand.vmem [shape: f32[3,32,32], index: 9, kind: input, shape index: {}]   ;;  %s5552_s10 = inlined_call_operand.vmem [shape: f32[1,32], index: 10, kind: input, shape index: {}]   ;;  %s5553_s11 = inlined_call_operand.vmem [shape: f32[2,32,96], index: 11, kind: input, shape index: {}]   ;;  %s5554_s12 = inlined_call_operand.vmem [shape: f32[2,1,96], index: 12, kind: input, shape index: {}]   ;;  %s5555_s13 = inlined_call_operand.vmem [shape: f32[2,32,32], index: 13, kind: input, shape index: {}]   ;;  %s5556_s14 = inlined_call_operand.vmem [shape: f32[2,1,32], index: 14, kind: input, shape index: {}]   ;;  %s5557_s15 = inlined_call_operand.vmem [shape: f32[2,1,32], index: 15, kind: input, shape index: {}]   ;;  %s5558_s16 = inlined_call_operand.vmem [shape: f32[2,1,32], index: 16, kind: input, shape index: {}]   ;;  %s5559_s17 = inlined_call_operand.vmem [shape: f32[2,3,32,64], index: 17, kind: input, shape index: {}]   ;;  %s5560_s18 = inlined_call_operand.vmem [shape: f32[2,1,64], index: 18, kind: input, shape index: {}]   ;;  %s5561_s19 = inlined_call_operand.vmem [shape: f32[2,3,64,32], index: 19, kind: input, shape index: {}]   ;;  %s5562_s20 = inlined_call_operand.vmem [shape: f32[2,1,32], index: 20, kind: input, shape index: {}]   ;;  %s5563_s21 = inlined_call_operand.vmem [shape: f32[2,1,32], index: 21, kind: input, shape index: {}]   ;;  %s5564_s22 = inlined_call_operand.vmem [shape: f32[2,1,32], index: 22, kind: input, shape index: {}]   ;;  %s5565_s23 = inlined_call_operand.vmem [shape: f32[1,32], index: 23, kind: input, shape index: {}]   ;;  %s5566_s24 = inlined_call_operand.<no memory space> [shape: f32[1,1], index: 24, kind: input, shape index: {}]   ;;  %s5567_s25 = inlined_call_operand.hbm [shape: f32[4,1,16], index: 25, kind: output, shape index: {}]  }
   0x1   :  { %5580 = sst [smem:[#allocation13_spill]] %s5542_s0  ;;  %v30_v0 = vstv %s5566_s24 }
   0x2   :  { %5581 = sst [smem:[#allocation14_spill]] %s5543_s1  ;;  %31 = vst [vmem:[#allocation2] sm:$0x1] %v30_v0 }
   0x3   :  { %5582 = sst [smem:[#allocation15_spill]] %s5544_s2 }
   0x4   :  { %5583 = sst [smem:[#allocation16_spill]] %s5545_s3 }
   0x5   :  { %5584 = sst [smem:[#allocation17_spill]] %s5546_s4 }
   0x6   :  { %5585 = sst [smem:[#allocation18_spill]] %s5547_s5 }
   0x7   :  { %5586 = sst [smem:[#allocation19_spill]] %s5548_s6 }
   0x8   :  { %5587 = sst [smem:[#allocation20_spill]] %s5549_s7 }
   0x9   :  { %5588 = sst [smem:[#allocation21_spill]] %s5550_s8 }
   0xa   :  { %5589 = sst [smem:[#allocation22_spill]] %s5551_s9 }
   0xb   :  { %5590 = sst [smem:[#allocation23_spill]] %s5567_s25 }
   0xc   :  { %32 = vsyncpa [#allocation4], 0 }
   0xd   :  { %34 = vsyncpa [#allocation4 + $0x1], 0  ;;  %s4923_s6 = smov 0   ;;  %s4925_s30 = smov 0  }
   0xe   :  { %s4927_s7 = smov 0   ;;  %s4929_s3 = smov 0  }
   0xf LB: > { %5591 = sst [smem:[#allocation6_spill]] %s4744_s6  ;;  %s4944_s24 = sadd.s32 4294967295, %s4756_s3   ;;  %s4756_s3 = sphi %s4929_s3, %s5623_s3   ;;  %s4752_s7 = sphi %s4927_s7, %s5628_s7   ;;  %s4748_s30 = sphi %s4925_s30, %s5627_s30   ;;  %s4744_s6 = sphi %s4923_s6, %s5626_s6  }
  0x10   : > { %5592 = sst [smem:[#allocation7_spill]] %s4752_s7  ;;  %s3785_s26 = sadd.s32 4294967294, %s4756_s3  }
  0x11   : > { %5593 = sst [smem:[#allocation8_spill]] %s4756_s3  ;;  %s4948_s1 = sadd.s32 1, %s4756_s3  }
  0x12   : > { %5594 = sst [smem:[#allocation9_spill]] %s4948_s1  ;;  %s597_s8 = sadd.s32 1, %s4752_s7 }
  0x13   : > { %s594_s27 = ssub.s32 %s4756_s3, %s4948_s1  ;;  %p607_p0 = scmp.ne.s32.totalorder %s4752_s7, %s4748_s30 }
  0x14   : > { %p595_p1 = scmp.eq.s32.totalorder %s594_s27, 0  ;;  %p608_p2 = scmp.eq.s32.totalorder %s4944_s24, 1 }
  0x15   : > { %p613_p3 = scmp.ne.s32.totalorder %s4748_s30, %s4744_s6  ;;  %p614_p4 = scmp.eq.s32.totalorder %s3785_s26, 1 }
  0x16   : > { %s4959_s4 = scalar_select %p595_p1, %s4752_s7, %s597_s8  }
  0x17   : > { %p4961_p5 = por %p608_p2, %p607_p0  ;;  %p4965_p6 = por %p614_p4, %p613_p3 }
  0x18   : > { %5595 = sst [smem:[#allocation10_spill]] %s4959_s4  ;;  %p3788_p7 = scmp.ge.s32.totalorder %s4756_s3, 1 }
  0x19   : > { %s5596_s28 = scalar_select %p4961_p5, 1, 0 }
  0x1a   : > { %s5598_s9 = scalar_select %p4965_p6, 1, 0 }
  0x1b   : > { %5597 = sst [smem:[#allocation11_spill]] %s5596_s28  ;;  %p740_p8 = scmp.lt.s32.totalorder %s4756_s3, 3 }
  0x1c   : > { %5599 = sst [smem:[#allocation12_spill]] %s5598_s9 }
  0x1d   : > { %p741_p9 = pnand %p3788_p7, %p740_p8 }
  0x1e   : > { %s5570_s5 = sand.u32 (!%p741_p9), 1, %s4748_s30   ;;  %v873_v1 = vlaneseq (!%p741_p9)  ;;  %s5600_s2 = sld [smem:[#allocation18_spill]] (!%p741_p9)  ;;  %v4778_v3 = vmov (!%p741_p9), 0   ;;  %v4779_v7 = vmov (!%p741_p9), -10000.0   ;;  %vm887_vm1 = vcmask (!%p741_p9), 64512  }
  0x1f   : > { %744 = sbr.rel (%p741_p9) target bundleno = 3415 (0xd57), region = 120  ;;  %s3790_s26 = sshll.u32 (!%p741_p9), %s4944_s24, 1  ;;  %4583 = vset.pattern.permute.xlu0 (!%p741_p9), %v4778_v3  ;;  %4584 = vset.pattern.permute.xlu1 (!%p741_p9), %v4778_v3  ;;  %vm1012_vm3 = vcmask (!%p741_p9), 1040384   ;;  %vm1023_vm4 = vcmask (!%p741_p9), 1046528   ;;  %vm1175_vm5 = vcmask (!%p741_p9), 261120  }
  0x20   : > { %s4978_s8 = sshll.u32 (!%p741_p9), %s5570_s5, 1  ;;  %p832_p10 = scmp.lt.s32.totalorder (!%p741_p9), %s3790_s26, 3  ;;  %v4981_v4 = vshrl.u32 (!%p741_p9), %v873_v1, 7  ;;  %v877_v5 = vand.u32 (!%p741_p9), 127, %v873_v1 }
  0x21   : > { %s5602_s1 = sld [smem:[#allocation17_spill]] (!%p741_p9)  ;;  %s5603_s25 = sld [smem:[#allocation14_spill]] (!%p741_p9) }
  0x22   : > { %v875_v6 = vadd.s32 (!%p741_p9), 8, %v4981_v4  ;;  %vm878_vm0 = vcmp.le.s32.totalorder (!%p741_p9), %v877_v5, %v4981_v4  ;;  %s5604_s7 = sld [smem:[#allocation15_spill]] (!%p741_p9)  ;;  %s5608_s4 = sld [smem:[#allocation21_spill]] (!%p741_p9) }
  0x23   : > { %v4986_v8 = vsel (!%p741_p9), %vm878_vm0, 0.0, %v4779_v7 }
  0x24   : > { %v886_v2 = vld [vmem:[%s5600_s2] sm:$0xff] (!%p741_p9)  ;;  %s5601_s2 = sld [smem:[#allocation16_spill]] (!%p741_p9)  ;;  %vm879_vm2 = vcmp.le.s32.totalorder (!%p741_p9), %v877_v5, %v875_v6 }
  0x25   : > { %4049 = vmatprep.subr.mxu0 (!%p741_p9), %v886_v2  ;;  %v5003_v9 = vsel (!%p741_p9), %vm879_vm2, 0.0, %v4779_v7 }
  0x26   : > { %4050 = vmatpush3.msra.mxu0 %v886_v2  ;;  %s5630_s26 = smov (!%p832_p10, %s3790_s26), 3 }
  0x27   : > { %s4988_s27 = sshll.u32 %s5630_s26, 4 }
  0x28   : > { %s862_s9 = scalar_lea.vmem %s5602_s1, %s4988_s27  ;;  %s843_s28 = scalar_lea.vmem %s5603_s25, %s4988_s27 }
  0x29   : > { %v882_v10 = vld [vmem:[%s862_s9] sm:$0xff]  ;;  %v883_v11 = vld [vmem:[%s862_s9 + $0x8] sm:$0xff]  ;;  %v884_v12 = vld [vmem:[%s862_s9 + $0x10] sm:$0xff]  ;;  %s850_s3 = scalar_lea.vmem %s5604_s7, %s4988_s27  ;;  %s5606_s1 = sld [smem:[#allocation20_spill]] }
  0x2a   : > { %s4993_s5 = scalar_lea.vmem %s5601_s2, %s5630_s26  ;;  %4051 = vmatprep.mubr.msk.f32.mxu0 %vm887_vm1, %v882_v10  ;;  %v1000_v13 = vld [vmem:[%s843_s28] sm:$0xff]  ;;  %v1001_v14 = vld [vmem:[%s843_s28 + $0x8] sm:$0xff]  ;;  %v885_v17 = vld [vmem:[%s862_s9 + $0x18] sm:$0xff]  ;;  %s5607_s25 = sld [smem:[#allocation13_spill]] }
  0x2b   : > { %4052 = vmatmul.mubr.msk.f32.vlgmr.msra.gmra.mrb[0].mxu0 %vm887_vm1, %v883_v11  ;;  %1063 = vperm.xlu0 %4583, %v1000_v13   ;;  %v1014_v15 = vrot.slane %v1001_v14, 7  ;;  %v1013_v16 = vrot.slane %v1000_v13, 7  ;;  %v1024_v18 = vrot.slane %v1000_v13, 1  ;;  %v1025_v19 = vrot.slane %v1001_v14, 1  ;;  %v1002_v22 = vld [vmem:[%s843_s28 + $0x10] sm:$0xff]  ;;  %v1003_v26 = vld [vmem:[%s843_s28 + $0x18] sm:$0xff] }
  0x2c   : > { %4054 = vmatprep.mubr.msk.f32.mxu0 %vm887_vm1, %v884_v12  ;;  %1067 = vperm.xlu1 %4584, %v1001_v14   ;;  %v1016_v24 = vrot.slane %v1002_v22, 7  ;;  %v1017_v28 = vrot.slane %v1003_v26, 7  ;;  %v1027_v30 = vrot.slane %v1002_v22, 1  ;;  %v1028_v31 = vrot.slane %v1003_v26, 1  ;;  %v869_v34 = vld [vmem:[%s850_s3] sm:$0xff]  ;;  %v870_v35 = vld [vmem:[%s850_s3 + $0x8] sm:$0xff] }
  0x2d   : > { %v1021_v20 = vsel %vm1012_vm3, 0.0, %v1013_v16  ;;  %v1015_v21 = vsel %vm1012_vm3, %v1013_v16, %v1014_v15  ;;  %v1026_v23 = vsel %vm1023_vm4, %v1024_v18, %v1025_v19  ;;  %v1032_v25 = vsel %vm1023_vm4, %v1025_v19, 0.0  ;;  %v871_v36 = vld [vmem:[%s850_s3 + $0x10] sm:$0xff]  ;;  %v872_v37 = vld [vmem:[%s850_s3 + $0x18] sm:$0xff]  ;;  %s5605_s28 = sld [smem:[#allocation22_spill]]  ;;  %s5609_s26 = sld [smem:[#allocation19_spill]] }
  0x2e   : > { %v1022_v27 = vsel %vm1012_vm3, 0.0, %v1016_v24  ;;  %v1018_v29 = vsel %vm1012_vm3, %v1016_v24, %v1017_v28  ;;  %v1029_v32 = vsel %vm1023_vm4, %v1027_v30, %v1028_v31  ;;  %v1033_v33 = vsel %vm1023_vm4, %v1028_v31, 0.0  ;;  %s5122_s3 = scalar_lea.vmem [#allocation3], %s4978_s8 }
  0x2f   : > { %4055 = vmatmul.mubr.msk.f32.gmra.mrb[2].mxu0 %vm887_vm1, %v885_v17  ;;  %1036 = vperm.xlu0 %4583, %v1021_v20   ;;  %v3809_v61 = vld [vmem:[%s5606_s1 + $0x1] ss:$0 sm:$0xff]  ;;  %v3808_v62 = vld [vmem:[%s5606_s1] ss:$0 sm:$0xff]  ;;  %v3810_v5 = vld [vmem:[%s5606_s1 + $0x2] ss:$0 sm:$0xff] }
  0x30   : > { %1040 = vperm.xlu1 %4584, %v1015_v21   ;;  %s836_s6 = scalar_lea.vmem %s5607_s25, %s4988_s27 }
  0x31   : > { %v866_v19 = vld [vmem:[%s836_s6 + $0x8] sm:$0xff]  ;;  %v865_v24 = vld [vmem:[%s836_s6] sm:$0xff] }
  0x33   : > { %1093 = vperm.xlu0 %4583, %v1026_v23   ;;  %v1142_v38 = vld [vmem:[%s5605_s28 + $0x20] sm:$0xff]  ;;  %v1143_v39 = vld [vmem:[%s5605_s28 + $0x28] sm:$0xff]  ;;  %v1144_v43 = vld [vmem:[%s5605_s28 + $0x30] sm:$0xff] }
  0x34   : > { %1098 = vperm.xlu1 %4584, %v1032_v25   ;;  %v4313_v40 = vpack.c.bf16 %v1143_v39, %v1142_v38  ;;  %v1138_v41 = vld [vmem:[%s5605_s28] sm:$0xff]  ;;  %v1139_v42 = vld [vmem:[%s5605_s28 + $0x8] sm:$0xff]  ;;  %v1145_v44 = vld [vmem:[%s5605_s28 + $0x38] sm:$0xff] }
  0x35   : > { %v4305_v45 = vpack.c.bf16 %v1139_v42, %v1138_v41  ;;  %v4317_v46 = vpack.c.bf16 %v1145_v44, %v1144_v43  ;;  %v1140_v47 = vld [vmem:[%s5605_s28 + $0x10] sm:$0xff]  ;;  %v1141_v48 = vld [vmem:[%s5605_s28 + $0x18] sm:$0xff]  ;;  %v1146_v50 = vld [vmem:[%s5605_s28 + $0x40] sm:$0xff] }
  0x36   : > { %4314 = vmatprep.subr.bf16.mxu1 %v4313_v40  ;;  %v4309_v49 = vpack.c.bf16 %v1141_v48, %v1140_v47  ;;  %v1147_v51 = vld [vmem:[%s5605_s28 + $0x48] sm:$0xff]  ;;  %v3811_v25 = vld [vmem:[%s5608_s4] ss:$0 sm:$0xff]  ;;  %v867_v38 = vld [vmem:[%s836_s6 + $0x10] sm:$0xff]  ;;  %s5132_s4 = smov 0  }
  0x37   : > { %1045 = vperm.xlu0 %4583, %v1022_v27   ;;  %4316 = vmatpush3.bf16.msra.mxu1 %v4313_v40  ;;  %v5051_v52 = vpack.c.bf16 %v1147_v51, %v1146_v50  ;;  %v3807_v30 = vld [vmem:[%s5609_s26] ss:$0 sm:$0xff]  ;;  %v1148_v39 = vld [vmem:[%s5605_s28 + $0x50] sm:$0xff]  ;;  %v1149_v40 = vld [vmem:[%s5605_s28 + $0x58] sm:$0xff] }
  0x38   : > { %1071 = vperm.xlu1 %4584, %v1002_v22   ;;  %4306 = vmatprep.subr.bf16.mxu0 %v4305_v45  ;;  %v4325_v50 = vpack.c.bf16 %v1149_v40, %v1148_v39 }
  0x39   : > { %4318 = vmatprep.subr.bf16.mxu1 %v4317_v46  ;;  %4308 = vmatpush3.bf16.msra.mxu0 %v4305_v45 }
  0x3a   : > { %4310 = vmatprep.subr.bf16.mxu0 %v4309_v49 }
  0x3b   : > { %1049 = vperm.xlu0 %4583, %v1018_v29   ;;  %4320 = vmatpush3.bf16.msra.mxu1 %v4317_v46 }
  0x3c   : > { %1075 = vperm.xlu1 %4584, %v1003_v26   ;;  %4465 = vmatprep.subr.bf16.mxu1 %v5051_v52 }
  0x3d   : > { %4312 = vmatpush3.bf16.msra.mxu0 %v4309_v49 }
  0x3e   : > { %4322 = vmatprep.subr.bf16.mxu0 %v5051_v52 }
  0x3f   : > { %1102 = vperm.xlu0 %4583, %v1029_v32  }
  0x40   : > { %1107 = vperm.xlu1 %4584, %v1033_v33  }
  0x43   : > { %1479 = vperm.xlu0 %4583, %v869_v34   ;;  %v868_v34 = vld [vmem:[%s836_s6 + $0x18] sm:$0xff] }
  0x44   : > { %1484 = vperm.xlu1 %4584, %v870_v35  }
  0x47   : > { %1489 = vperm.xlu0 %4583, %v871_v36  }
  0x48   : > { %1494 = vperm.xlu1 %4584, %v872_v37  }
  0xaa   : > { %v1064_v54 = vpop.permute.xlu0 %1063 }
  0xab   : > { %v1068_v53 = vpop.permute.xlu1 %1067  ;;  %v1084_v1 = vmul.f32 %v3809_v61, %v1064_v54 }
  0xac   : > { %v1085_v63 = vmul.f32 %v3809_v61, %v1068_v53 }
  0xae   : > { %v1037_v56 = vpop.permute.xlu0 %1036 }
  0xaf   : > { %v1041_v55 = vpop.permute.xlu1 %1040  ;;  %v1058_v2 = vmul.f32 %v3808_v62, %v1037_v56 }
  0xb0   : > { %v1059_v0 = vmul.f32 %v3808_v62, %v1041_v55 }
  0xb1   : > { %v1088_v14 = vadd.f32 %v1084_v1, %v1058_v2 }
  0xb2   : > { %v1094_v58 = vpop.permute.xlu0 %1093  ;;  %v1089_v10 = vadd.f32 %v1085_v63, %v1059_v0 }
  0xb3   : > { %v1099_v57 = vpop.permute.xlu1 %1098  ;;  %v1116_v15 = vmul.f32 %v3810_v5, %v1094_v58 }
  0xb4   : > { %v1117_v11 = vmul.f32 %v3810_v5, %v1099_v57 }
  0xb5   : > { %v1120_v26 = vadd.f32 %v1116_v15, %v1088_v14 }
  0xb6   : > { %v1046_v60 = vpop.permute.xlu0 %1045  ;;  %v1121_v20 = vadd.f32 %v1117_v11, %v1089_v10 }
  0xb7   : > { %v1072_v59 = vpop.permute.xlu1 %1071  ;;  %v1060_v16 = vmul.f32 %v3808_v62, %v1046_v60  ;;  %v1130_v41 = vadd.f32 %v3811_v25, %v1120_v26 }
  0xb8   : > { %v1086_v17 = vmul.f32 %v3809_v61, %v1072_v59  ;;  %v1131_v35 = vadd.f32 %v3811_v25, %v1121_v20 }
  0xba   : > { %v1050_v7 = vpop.permute.xlu0 %1049  ;;  %v1090_v27 = vadd.f32 %v1086_v17, %v1060_v16 }
  0xbb   : > { %v1076_v6 = vpop.permute.xlu1 %1075  ;;  %v1061_v12 = vmul.f32 %v3808_v62, %v1050_v7 }
  0xbc   : > { %v1087_v13 = vmul.f32 %v3809_v61, %v1076_v6 }
  0xbe   : > { %v1091_v21 = vadd.f32 %v1087_v13, %v1061_v12  ;;  %v1103_v22 = vpop.permute.xlu0 %1102 }
  0xbf   : > { %v1108_v18 = vpop.permute.xlu1 %1107  ;;  %v1118_v28 = vmul.f32 %v3810_v5, %v1103_v22 }
  0xc0   : > { %v1119_v23 = vmul.f32 %v3810_v5, %v1108_v18 }
  0xc1   : > { %v1122_v42 = vadd.f32 %v1118_v28, %v1090_v27 }
  0xc2   : > { %v1123_v36 = vadd.f32 %v1119_v23, %v1091_v21  ;;  %v5104_v22 = vpop.permute.xlu0 %1479  ;;  %v3824_v23 = vld [vmem:[%s5552_s10] ss:$0 sm:$0xff] }
  0xc3   : > { %v1132_v56 = vadd.f32 %v3811_v25, %v1122_v42  ;;  %v5102_v21 = vpop.permute.xlu1 %1484 }
  0xc4   : > { %v1133_v51 = vadd.f32 %v3811_v25, %v1123_v36 }
  0xfe   : > { %v4053_v29 = vpop.f32.mrb[0].mxu0 }
  0xff   : > { %v986_v31 = vadd.f32 %v4053_v29, %v866_v19  ;;  %v966_v32 = vpop.f32.mrb[1].mxu0 }
 0x100   : > { %v985_v33 = vadd.f32 %v966_v32, %v865_v24 }
 0x101   : > { %v997_v37 = vadd.f32 %v3807_v30, %v986_v31 }
 0x102   : > { %v996_v43 = vadd.f32 %v3807_v30, %v985_v33  ;;  %v4056_v44 = vpop.f32.mrb[2].mxu0 }
 0x103   : > { %v1135_v45 = vadd.f32 %v1131_v35, %v997_v37  ;;  %v988_v46 = vadd.f32 %v4056_v44, %v868_v34  ;;  %v976_v47 = vpop.f32.mrb[3].mxu0  ;;  %v5109_v35 = vpop.permute.xlu1 %1494 }
 0x104   : > { %v987_v48 = vadd.f32 %v976_v47, %v867_v38  ;;  %v1134_v49 = vadd.f32 %v1130_v41, %v996_v43  ;;  %v5112_v38 = vpop.permute.xlu0 %1489 }
 0x105   : > { %v1156_v53 = vrot.slane %v1135_v45, 7  ;;  %v999_v54 = vadd.f32 %v3807_v30, %v988_v46  ;;  %v1166_v55 = vrot.slane %v1135_v45, 1 }
 0x106   : > { %v998_v57 = vadd.f32 %v3807_v30, %v987_v48  ;;  %4079 = vmatprep.mubr.msk.f32.mxu1 %vm1175_vm5, %v1134_v49  ;;  %v1155_v58 = vrot.slane %v1134_v49, 7  ;;  %v1165_v59 = vrot.slane %v1134_v49, 1 }
 0x107   : > { %v1137_v60 = vadd.f32 %v1133_v51, %v999_v54  ;;  %4080 = vmatmul.mubr.msk.f32.vlgmr.msra.gmra.mrb[0].mxu1 %vm1175_vm5, %v1135_v45  ;;  %v1173_v12 = vsel %vm1023_vm4, %v1166_v55, 0.0 }
 0x108   : > { %v1136_v61 = vadd.f32 %v1132_v56, %v998_v57  ;;  %4467 = vmatpush3.bf16.msra.mxu1 %v5051_v52  ;;  %v1163_v62 = vsel %vm1012_vm3, 0.0, %v1155_v58  ;;  %v1157_v63 = vsel %vm1012_vm3, %v1155_v58, %v1156_v53  ;;  %v1167_v0 = vsel %vm1023_vm4, %v1165_v59, %v1166_v55 }
 0x109   : > { %4065 = vmatprep.mubr.msk.f32.mxu0 %vm1175_vm5, %v1163_v62  ;;  %4466 = vmatprep.subr.bf16.mxu1 %v4325_v50  ;;  %v1169_v1 = vrot.slane %v1137_v60, 1  ;;  %v1159_v2 = vrot.slane %v1137_v60, 7 }
 0x10a   : > { %4066 = vmatmul.mubr.msk.f32.vlgmr.msra.gmra.mrb[4].mxu0 %vm1175_vm5, %v1157_v63  ;;  %4082 = vmatprep.mubr.msk.f32.mxu1 %vm1175_vm5, %v1136_v61  ;;  %v1158_v5 = vrot.slane %v1136_v61, 7  ;;  %v1168_v6 = vrot.slane %v1136_v61, 1 }
 0x10b   : > { %4083 = vmatmul.mubr.msk.f32.gmra.mrb[2].mxu1 %vm1175_vm5, %v1137_v60  ;;  %4324 = vmatpush3.bf16.msra.mxu0 %v5051_v52  ;;  %v1174_v52 = vsel %vm1023_vm4, %v1169_v1, 0.0 }
 0x10c   : > { %v1164_v7 = vsel %vm1012_vm3, 0.0, %v1158_v5  ;;  %4468 = vmatpush3.bf16.msra.mxu1 %v4325_v50  ;;  %v1170_v10 = vsel %vm1023_vm4, %v1168_v6, %v1169_v1  ;;  %v1160_v11 = vsel %vm1012_vm3, %v1158_v5, %v1159_v2  ;;  %4326 = vmatprep.subr.bf16.mxu0 %v4325_v50 }
 0x10d   : > { %4068 = vmatprep.mubr.msk.f32.mxu0 %vm1175_vm5, %v1164_v7  ;;  %4096 = vmatprep.mubr.msk.f32.mxu1 %vm1175_vm5, %v1170_v10 }
 0x10e   : > { %4069 = vmatmul.mubr.msk.f32.gmra.mrb[6].mxu0 %vm1175_vm5, %v1160_v11 }
 0x10f   : > { %4328 = vmatpush3.bf16.msra.mxu0 %v4325_v50  ;;  %4093 = vmatprep.mubr.msk.f32.mxu0 %vm1175_vm5, %v1167_v0 }
 0x112   : > { %4094 = vmatmul.mubr.msk.f32.vlgmr.msra.gmra.mrb[8].mxu0 %vm1175_vm5, %v1173_v12 }
 0x113   : > { %4097 = vmatmul.mubr.msk.f32.vlgmr.msra.gmra.mrb[2].mxu1 %vm1175_vm5, %v1174_v52 }
 0x1da   : > { %v4081_v13 = vpop.f32.mrb[0].mxu1 }
 0x1db   : > { %v1345_v14 = vpop.f32.mrb[1].mxu1 }
 0x1dd   : > { %v4067_v15 = vpop.f32.mrb[4].mxu0 }
 0x1de   : > { %v1365_v16 = vadd.f32 %v4081_v13, %v4067_v15  ;;  %v1252_v17 = vpop.f32.mrb[5].mxu0 }
 0x1df   : > { %v1364_v18 = vadd.f32 %v1345_v14, %v1252_v17 }
 0x1e1   : > { %v4070_v19 = vpop.f32.mrb[6].mxu0 }
 0x1e2   : > { %v1262_v20 = vpop.f32.mrb[7].mxu0 }
 0x1e5   : > { %v4095_v24 = vpop.f32.mrb[8].mxu0 }
 0x1e6   : > { %v1464_v25 = vadd.f32 %v4095_v24, %v1365_v16  ;;  %v1444_v26 = vpop.f32.mrb[9].mxu0  ;;  %v4098_v27 = vpop.f32.mrb[2].mxu1 }
 0x1e7   : > { %v1463_v28 = vadd.f32 %v1444_v26, %v1364_v18  ;;  %v4473_v29 = vadd.f32 %v4098_v27, %v4070_v19  ;;  %v1454_v30 = vpop.f32.mrb[3].mxu1 }
 0x1e8   : > { %v1474_v31 = vadd.f32 %v3824_v23, %v1464_v25  ;;  %v4474_v32 = vadd.f32 %v1454_v30, %v1262_v20 }
 0x1e9   : > { %v1473_v33 = vadd.f32 %v3824_v23, %v1463_v28  ;;  %v1476_v34 = vadd.f32 %v4473_v29, %v3824_v23 }
 0x1ea   : > { %v1498_v36 = vmul.f32 %v5102_v21, %v1474_v31  ;;  %v1475_v37 = vadd.f32 %v4474_v32, %v3824_v23 }
 0x1eb   : > { %v1497_v39 = vmul.f32 %v5104_v22, %v1473_v33  ;;  %v1500_v40 = vmul.f32 %v5109_v35, %v1476_v34 }
 0x1ec   : > { %v1502_v41 = vmul.f32 %v1498_v36, %v5102_v21   ;;  %v1499_v42 = vmul.f32 %v5112_v38, %v1475_v37 }
 0x1ed   : > { %v1501_v43 = vmul.f32 %v1497_v39, %v5104_v22   ;;  %v1504_v44 = vmul.f32 %v1500_v40, %v5109_v35  }
 0x1ee   : > { %v1503_v45 = vmul.f32 %v1499_v42, %v5112_v38  }
 0x1ef LB: >> { %s3825_s8 = sshll.u32 %s4776_s4, 5  ;;  %4107 = vmatprep.mubr.msk.f32.mxu0 %vm1175_vm5, %v4772_v43  ;;  %s1521_s2 = scalar_lea.vmem %s5554_s12, %s4776_s4  ;;  %vm1665_vm6 = vcmask 130048   ;;  %vm2724_vm8 = vcmask 1041408   ;;  %vm3068_vm9 = vcmask 523264   ;;  %s4776_s4 = sphi %s5132_s4, %s1510_s4   ;;  %v4772_v43 = vphi %v1501_v43, %v5615_v43   ;;  %v4768_v41 = vphi %v1502_v41, %v5614_v41   ;;  %v4764_v45 = vphi %v1503_v45, %v5613_v45   ;;  %v4760_v44 = vphi %v1504_v44, %v5612_v44  }
 0x1f0   : >> { %s1516_s26 = scalar_lea.vmem %s5553_s11, %s3825_s8  ;;  %v3830_v53 = vld [vmem:[%s1521_s2] ss:$0 sm:$0xff]  ;;  %s4780_s25 = smov 112   ;;  %vm5182_vm7 = vmpackc.low %vm1665_vm6, %vm1665_vm6 }
 0x1f1   : >> { %v1517_v46 = vld [vmem:[%s1516_s26] sm:$0xff]  ;;  %v1518_v47 = vld [vmem:[%s1516_s26 + $0x8] sm:$0xff]  ;;  %v1519_v48 = vld [vmem:[%s1516_s26 + $0x10] sm:$0xff]  ;;  %s4781_s6 = smov 96   ;;  %s4782_s7 = smov 64  }
 0x1f2   : >> { %v4329_v49 = vpack.c.bf16 %v1518_v47, %v1517_v46  ;;  %v1520_v50 = vld [vmem:[%s1516_s26 + $0x18] sm:$0xff]  ;;  %s1523_s26 = scalar_lea.vmem %s5555_s13, %s3825_s8  ;;  %s4783_s0 = smov 16  }
 0x1f3   : >> { %v4333_v51 = vpack.c.bf16 %v1520_v50, %v1519_v48  ;;  %s1528_s2 = scalar_lea.vmem %s5556_s14, %s4776_s4  ;;  %s2678_s9 = smul.u32 192, %s4776_s4 }
 0x1f4   : >> { %4330 = vmatprep.subr.bf16.mxu0 %v4329_v49 }
 0x1f5   : >> { %4332 = vmatpush3.bf16.msra.mxu0 %v4329_v49  ;;  %s5325_s8 = scalar_lea.vmem %s5561_s19, %s2678_s9  ;;  %s2587_s9 = scalar_lea.vmem %s5558_s16, %s4776_s4 }
 0x1f6   : >> { %4334 = vmatprep.subr.bf16.mxu0 %v4333_v51 }
 0x1f9   : >> { %4336 = vmatpush3.bf16.msra.mxu0 %v4333_v51 }
 0x1fc   : >> { %4108 = vmatmul.mubr.msk.f32.vlgmr.msra.gmra.mrb[0].mxu0 %vm1175_vm5, %v4768_v41 }
 0x1fd   : >> { %4110 = vmatprep.mubr.msk.f32.mxu0 %vm1175_vm5, %v4764_v45 }
 0x200   : >> { %4111 = vmatmul.mubr.msk.f32.gmra.mrb[2].mxu0 %vm1175_vm5, %v4760_v44 }
 0x2cf   : >> { %v4109_v54 = vpop.f32.mrb[0].mxu0 }
 0x2d0   : >> { %v1634_v55 = vadd.f32 %v4109_v54, %v3830_v53  ;;  %v1608_v56 = vpop.f32.mrb[1].mxu0 }
 0x2d1   : >> { %v1633_v57 = vadd.f32 %v3830_v53, %v1608_v56 }
 0x2d2   : >> { %v1654_v20 = vmul.f32 0.25, %v1634_v55 }
 0x2d3   : >> { %1641 = vrot.lane.b32.xlu0 %v1633_v57, %s4780_s25  ;;  %v4112_v58 = vpop.f32.mrb[2].mxu0  ;;  %v1653_v59 = vmul.f32 0.25, %v1633_v57  ;;  %v5167_v60 = vpack.i.bf16 %v1634_v55, %v1633_v57 }
 0x2d4   : >> { %v1618_v61 = vpop.f32.mrb[3].mxu0  ;;  %v1636_v62 = vadd.f32 %v4112_v58, %v3830_v53 }
 0x2d5   : >> { %v1635_v63 = vadd.f32 %v3830_v53, %v1618_v61  ;;  %4117 = vmatprep.mubr.msk.f32.mxu1 %vm1665_vm6, %v1653_v59 }
 0x2d6   : >> { %v1656_v24 = vmul.f32 0.25, %v1636_v62 }
 0x2d7   : >> { %1643 = vrot.lane.b32.xlu0 %v1634_v55, %s4780_s25  ;;  %1645 = vrot.lane.b32.xlu1 %v1635_v63, %s4780_s25  ;;  %v5170_v0 = vpack.i.bf16 %v1636_v62, %v1635_v63  ;;  %v1655_v1 = vmul.f32 0.25, %v1635_v63 }
 0x2d9   : >> { %4124 = vmatprep.mubr.msk.f32.mxu0 %vm1665_vm6, %v1655_v1 }
 0x2db   : >> { %4586 = vrot.lane.b32.xlu0 %v5167_v60, %s4781_s6  ;;  %1647 = vrot.lane.b32.xlu1 %v1636_v62, %s4780_s25  ;;  %s2662_s25 = smul.u32 96, %s4776_s4 }
 0x2dd   : >> { %s5310_s27 = scalar_lea.vmem %s5559_s17, %s2662_s25  ;;  %s2585_s25 = scalar_lea.vmem %s5557_s15, %s4776_s4 }
 0x2df   : >> { %4591 = vrot.lane.b32.xlu1 %v5170_v0, %s4781_s6 }
 0x345   : >> { %v1642_v2 = vpop.permute.xlu0 %1641 }
 0x346   : >> { %v1657_v23 = vmul.f32 0.25, %v1642_v2 }
 0x349   : >> { %v1644_v5 = vpop.permute.xlu0 %1643  ;;  %v1646_v6 = vpop.permute.xlu1 %1645 }
 0x34a   : >> { %v5175_v7 = vpack.i.bf16 %v1644_v5, %v1642_v2  ;;  %v1659_v25 = vmul.f32 0.25, %v1646_v6  ;;  %v1658_v34 = vmul.f32 0.25, %v1644_v5 }
 0x34c   : >> { %4596 = vrot.lane.b32.xlu0 %v5175_v7, %s4781_s6 }
 0x34d   : >> { %v4587_v10 = vpop.permute.xlu0 %4586  ;;  %v1648_v11 = vpop.permute.xlu1 %1647 }
 0x34e   : >> { %v4589_v12 = vunpack.i.h.bf16 %v4587_v10  ;;  %v4588_v52 = vunpack.i.l.bf16 %v4587_v10  ;;  %v5178_v13 = vpack.i.bf16 %v1648_v11, %v1646_v6  ;;  %v1660_v36 = vmul.f32 0.25, %v1648_v11 }
 0x350   : >> { %v4337_v15 = vpack.c.bf16 %v4589_v12, %v4588_v52  ;;  %4601 = vrot.lane.b32.xlu1 %v5178_v13, %s4781_s6 }
 0x351   : >> { %v4592_v16 = vpop.permute.xlu1 %4591 }
 0x352   : >> { %v4594_v17 = vunpack.i.h.bf16 %v4592_v16  ;;  %v4593_v18 = vunpack.i.l.bf16 %v4592_v16  ;;  %4339 = vmatprep.subr.msk.bf16.mxu1 %vm5182_vm7, %v4337_v15 }
 0x353   : >> { %4342 = vmatpush3.bf16.xpose.msk.msra.mxu1 %vm5182_vm7, %v4337_v15 }
 0x354   : >> { %v4343_v19 = vpack.c.bf16 %v4594_v17, %v4593_v18 }
 0x356   : >> { %4345 = vmatprep.subr.msk.bf16.mxu0 %vm5182_vm7, %v4343_v19 }
 0x357   : >> { %4348 = vmatpush3.bf16.xpose.msk.msra.mxu0 %vm5182_vm7, %v4343_v19 }
 0x35a   : >> { %4118 = vmatmul.mubr.msk.f32.vlgmr.msra.gmra.mrb[0].mxu1 %vm1665_vm6, %v1654_v20 }
 0x35b   : >> { %4131 = vmatprep.mubr.msk.f32.mxu1 %vm1665_vm6, %v1657_v23 }
 0x35e   : >> { %4125 = vmatmul.mubr.msk.f32.vlgmr.msra.gmra.mrb[4].mxu0 %vm1665_vm6, %v1656_v24 }
 0x35f   : >> { %4138 = vmatprep.mubr.msk.f32.mxu0 %vm1665_vm6, %v1659_v25 }
 0x3be   : >> { %v4597_v26 = vpop.permute.xlu0 %4596 }
 0x3bf   : >> { %v4599_v27 = vunpack.i.h.bf16 %v4597_v26  ;;  %v4598_v28 = vunpack.i.l.bf16 %v4597_v26 }
 0x3c1   : >> { %v4349_v29 = vpack.c.bf16 %v4599_v27, %v4598_v28 }
 0x3c2   : >> { %v4602_v30 = vpop.permute.xlu1 %4601 }
 0x3c3   : >> { %4351 = vmatprep.subr.msk.bf16.mxu1 %vm5182_vm7, %v4349_v29  ;;  %v4604_v31 = vunpack.i.h.bf16 %v4602_v30  ;;  %v4603_v32 = vunpack.i.l.bf16 %v4602_v30 }
 0x3c4   : >> { %4354 = vmatpush3.bf16.xpose.msk.msra.mxu1 %vm5182_vm7, %v4349_v29 }
 0x3c5   : >> { %v4355_v33 = vpack.c.bf16 %v4604_v31, %v4603_v32 }
 0x3c7   : >> { %4357 = vmatprep.subr.msk.bf16.mxu0 %vm5182_vm7, %v4355_v33 }
 0x3c8   : >> { %4360 = vmatpush3.bf16.xpose.msk.msra.mxu0 %vm5182_vm7, %v4355_v33 }
 0x3cb   : >> { %4132 = vmatmul.mubr.msk.f32.vlgmr.msra.gmra.mrb[2].mxu1 %vm1665_vm6, %v1658_v34 }
 0x3cf   : >> { %4139 = vmatmul.mubr.msk.f32.vlgmr.msra.gmra.mrb[6].mxu0 %vm1665_vm6, %v1660_v36 }
 0x42d   : >> { %v4119_v37 = vpop.f32.mrb[0].mxu1 }
 0x42e   : >> { %v1748_v39 = vadd.f32 %v4119_v37, %v5003_v9  ;;  %v1742_v40 = vpop.f32.mrb[1].mxu1 }
 0x42f   : >> { %v1743_v42 = vadd.f32 %v1742_v40, %v4986_v8 }
 0x430   : >> { %v2021_v46 = vsel %vm1665_vm6, %v1748_v39, -inf }
 0x431   : >> { %2022 = vmax.xlane.f32.xlu1 %v2021_v46  ;;  %v4126_v47 = vpop.f32.mrb[4].mxu0  ;;  %v2018_v48 = vsel %vm1665_vm6, %v1743_v42, -inf }
 0x432   : >> { %v1837_v49 = vadd.f32 %v4126_v47, %v5003_v9  ;;  %2019 = vmax.xlane.f32.xlu0 %v2018_v48  ;;  %v1831_v50 = vpop.f32.mrb[5].mxu0 }
 0x433   : >> { %v1832_v51 = vadd.f32 %v1831_v50, %v4986_v8 }
 0x434   : >> { %v2027_v53 = vsel %vm1665_vm6, %v1837_v49, -inf }
 0x435   : >> { %2028 = vmax.xlane.f32.xlu1 %v2027_v53  ;;  %v2024_v54 = vsel %vm1665_vm6, %v1832_v51, -inf }
 0x436   : >> { %2025 = vmax.xlane.f32.xlu0 %v2024_v54 }
 0x49e   : >> { %v4133_v55 = vpop.f32.mrb[2].mxu1 }
 0x49f   : >> { %v1920_v56 = vpop.f32.mrb[3].mxu1  ;;  %v1926_v58 = vadd.f32 %v4133_v55, %v5003_v9 }
 0x4a0   : >> { %v1921_v57 = vadd.f32 %v1920_v56, %v4986_v8 }
 0x4a1   : >> { %v2033_v2 = vsel %vm1665_vm6, %v1926_v58, -inf }
 0x4a2   : >> { %v2030_v59 = vsel %vm1665_vm6, %v1921_v57, -inf  ;;  %v4140_v61 = vpop.f32.mrb[6].mxu0 }
 0x4a3   : >> { %2031 = vmax.xlane.f32.xlu0 %v2030_v59  ;;  %v2009_v62 = vpop.f32.mrb[7].mxu0  ;;  %v2015_v1 = vadd.f32 %v4140_v61, %v5003_v9 }
 0x4a4   : >> { %v2010_v63 = vadd.f32 %v2009_v62, %v4986_v8 }
 0x4a5   : >> { %v2039_v6 = vsel %vm1665_vm6, %v2015_v1, -inf }
 0x4a6   : >> { %v2036_v5 = vsel %vm1665_vm6, %v2010_v63, -inf }
 0x4a7   : >> { %2034 = vmax.xlane.f32.xlu0 %v2033_v2  ;;  %2037 = vmax.xlane.f32.xlu1 %v2036_v5 }
 0x4ab   : >> { %2040 = vmax.xlane.f32.xlu0 %v2039_v6 }
 0x4b8   : >> { %4606 = vrot.lane.b32.xlu1 %v5167_v60, %s4782_s7 }
 0x4be   : >> { %v2023_v10 = vpop.xlane.xlu1 %2022 }
 0x4bf   : >> { %v2043_v11 = vsub.f32 %v1748_v39, %v2023_v10  ;;  %v2020_v52 = vpop.xlane.xlu0 %2019 }
 0x4c0   : >> { %v2042_v14 = vsub.f32 %v1743_v42, %v2020_v52 }
 0x4c1   : >> { %v2052_v12 = vmul.f32 1.442695, %v2043_v11 }
 0x4c2   : >> { %v2029_v15 = vpop.xlane.xlu1 %2028  ;;  %v2050_v16 = vmul.f32 1.442695, %v2042_v14 }
 0x4c3   : >> { %4625 = vpow2.f32 %v2052_v12  ;;  %v2045_v17 = vsub.f32 %v1837_v49, %v2029_v15  ;;  %v2026_v18 = vpop.xlane.xlu0 %2025 }
 0x4c4   : >> { %4627 = vpow2.f32 %v2050_v16  ;;  %v2044_v24 = vsub.f32 %v1832_v51, %v2026_v18 }
 0x4c5   : >> { %v2056_v23 = vmul.f32 1.442695, %v2045_v17 }
 0x4c6   : >> { %v2054_v60 = vmul.f32 1.442695, %v2044_v24 }
 0x4c7   : >> { %4629 = vpow2.f32 %v2056_v23 }
 0x4c8   : >> { %4631 = vpow2.f32 %v2054_v60 }
 0x4cd   : >> { %v5227_v19 = vpop.eup %4625 }
 0x4ce   : >> { %v2069_v20 = vsel %vm1665_vm6, %v5227_v19, 0.0  ;;  %v4628_v25 = vpop.eup %4627 }
 0x4cf   : >> { %2070 = vadd.xlane.f32.xlu0 %v2069_v20  ;;  %v2066_v26 = vsel %vm1665_vm6, %v4628_v25, 0.0 }
 0x4d1   : >> { %v5232_v27 = vpop.eup %4629 }
 0x4d2   : >> { %v2075_v28 = vsel %vm1665_vm6, %v5232_v27, 0.0  ;;  %v4632_v29 = vpop.eup %4631 }
 0x4d3   : >> { %v2072_v30 = vsel %vm1665_vm6, %v4632_v29, 0.0 }
 0x4dc   : >> { %2067 = vadd.xlane.f32.xlu1 %v2066_v26 }
 0x4e0   : >> { %2076 = vadd.xlane.f32.xlu1 %v2075_v28 }
 0x4e4   : >> { %2073 = vadd.xlane.f32.xlu1 %v2072_v30 }
 0x4f5   : >> { %4616 = vrot.lane.b32.xlu1 %v5175_v7, %s4782_s7 }
 0x530   : >> { %v2032_v31 = vpop.xlane.xlu0 %2031 }
 0x531   : >> { %v2046_v32 = vsub.f32 %v1921_v57, %v2032_v31 }
 0x533   : >> { %v2058_v39 = vmul.f32 1.442695, %v2046_v32 }
 0x534   : >> { %v2035_v33 = vpop.xlane.xlu0 %2034  ;;  %v2038_v34 = vpop.xlane.xlu1 %2037 }
 0x535   : >> { %v2047_v36 = vsub.f32 %v1926_v58, %v2035_v33  ;;  %v2048_v37 = vsub.f32 %v2010_v63, %v2038_v34 }
 0x537   : >> { %v2060_v40 = vmul.f32 1.442695, %v2047_v36  ;;  %v2062_v42 = vmul.f32 1.442695, %v2048_v37 }
 0x538   : >> { %v2041_v46 = vpop.xlane.xlu0 %2040  ;;  %v4607_v47 = vpop.permute.xlu1 %4606 }
 0x539   : >> { %4633 = vpow2.f32 %v2060_v40  ;;  %v2049_v48 = vsub.f32 %v2015_v1, %v2041_v46  ;;  %v4609_v49 = vunpack.i.h.bf16 %v4607_v47  ;;  %v4608_v50 = vunpack.i.l.bf16 %v4607_v47  ;;  %v1525_v46 = vld [vmem:[%s1523_s26 + $0x8] sm:$0xff]  ;;  %v1526_v47 = vld [vmem:[%s1523_s26 + $0x10] sm:$0xff] }
 0x53a   : >> { %4635 = vpow2.f32 %v2062_v42 }
 0x53b   : >> { %4637 = vpow2.f32 %v2058_v39  ;;  %v2064_v51 = vmul.f32 1.442695, %v2049_v48  ;;  %v4361_v53 = vpack.c.bf16 %v4609_v49, %v4608_v50  ;;  %v1527_v49 = vld [vmem:[%s1523_s26 + $0x18] sm:$0xff] }
 0x53c   : >> { %v4381_v50 = vpack.c.bf16 %v1527_v49, %v1526_v47  ;;  %v2665_v49 = vld [vmem:[%s5310_s27 + $0x8] sm:$0xff] }
 0x53d   : >> { %4362 = vmatprep.subr.bf16.mxu1 %v4361_v53  ;;  %4639 = vpow2.f32 %v2064_v51 }
 0x53e   : >> { %4364 = vmatpush3.bf16.msra.mxu1 %v4361_v53 }
 0x543   : >> { %v4634_v7 = vpop.eup %4633 }
 0x544   : >> { %v5239_v54 = vpop.eup %4635  ;;  %v2081_v55 = vsel %vm1665_vm6, %v4634_v7, 0.0 }
 0x545   : >> { %v4638_v56 = vpop.eup %4637  ;;  %v2084_v57 = vsel %vm1665_vm6, %v5239_v54, 0.0  ;;  %2082 = vadd.xlane.f32.xlu0 %v2081_v55 }
 0x546   : >> { %2085 = vadd.xlane.f32.xlu1 %v2084_v57  ;;  %v2078_v58 = vsel %vm1665_vm6, %v4638_v56, 0.0 }
 0x547   : >> { %v4640_v59 = vpop.eup %4639 }
 0x548   : >> { %v2087_v61 = vsel %vm1665_vm6, %v4640_v59, 0.0 }
 0x549   : >> { %2079 = vadd.xlane.f32.xlu0 %v2078_v58 }
 0x54d   : >> { %2088 = vadd.xlane.f32.xlu0 %v2087_v61 }
 0x557   : >> { %4621 = vrot.lane.b32.xlu1 %v5178_v13, %s4782_s7 }
 0x55c   : >> { %v2071_v62 = vpop.xlane.xlu0 %2070 }
 0x55d   : >> { %4641 = vrcp.f32 %v2071_v62 }
 0x563   : >> { %4611 = vrot.lane.b32.xlu0 %v5170_v0, %s4782_s7  ;;  %s3378_s7 = scalar_lea.vmem %s5563_s21, %s4776_s4 }
 0x567   : >> { %v4642_v5 = vpop.eup %4641 }
 0x568   : >> { %v2093_v12 = vmul.f32 %v4642_v5, %v5227_v19 }
 0x569   : >> { %v2068_v63 = vpop.xlane.xlu1 %2067 }
 0x56a   : >> { %4643 = vrcp.f32 %v2068_v63 }
 0x56d   : >> { %v2077_v1 = vpop.xlane.xlu1 %2076 }
 0x571   : >> { %v2074_v2 = vpop.xlane.xlu1 %2073 }
 0x572   : >> { %4645 = vrcp.f32 %v2074_v2 }
 0x574   : >> { %v4644_v6 = vpop.eup %4643 }
 0x575   : >> { %v4617_v10 = vpop.permute.xlu1 %4616  ;;  %v2091_v11 = vmul.f32 %v4644_v6, %v4628_v25 }
 0x576   : >> { %v4619_v52 = vunpack.i.h.bf16 %v4617_v10  ;;  %v4618_v14 = vunpack.i.l.bf16 %v4617_v10  ;;  %v3859_v10 = vld [vmem:[%s1528_s2] ss:$0 sm:$0xff]  ;;  %s2704_s2 = scalar_lea.vmem %s5562_s20, %s4776_s4 }
 0x577   : >> { %4145 = vmatprep.mubr.msk.f32.mxu1 %vm1665_vm6, %v2091_v11 }
 0x578   : >> { %v4369_v13 = vpack.c.bf16 %v4619_v52, %v4618_v14  ;;  %4146 = vmatmul.mubr.msk.f32.vlgmr.msra.gmra.mrb[4].mxu1 %vm1665_vm6, %v2093_v12 }
 0x57a   : >> { %4370 = vmatprep.subr.bf16.mxu0 %v4369_v13 }
 0x57b   : >> { %4372 = vmatpush3.bf16.msra.mxu0 %v4369_v13 }
 0x57c   : >> { %v4646_v0 = vpop.eup %4645 }
 0x57d   : >> { %v2095_v15 = vmul.f32 %v4646_v0, %v4632_v29 }
 0x57f   : >> { %4152 = vmatprep.mubr.msk.f32.mxu1 %vm1665_vm6, %v2095_v15 }
 0x5d2   : >> { %v2083_v16 = vpop.xlane.xlu0 %2082 }
 0x5d3   : >> { %v2086_v17 = vpop.xlane.xlu1 %2085  ;;  %4647 = vrcp.f32 %v2083_v16 }
 0x5d6   : >> { %v2080_v18 = vpop.xlane.xlu0 %2079 }
 0x5d7   : >> { %4649 = vrcp.f32 %v2080_v18  ;;  %v4622_v20 = vpop.permute.xlu1 %4621 }
 0x5d8   : >> { %4651 = vrcp.f32 %v2077_v1  ;;  %v4624_v24 = vunpack.i.h.bf16 %v4622_v20  ;;  %v4623_v60 = vunpack.i.l.bf16 %v4622_v20 }
 0x5d9   : >> { %4653 = vrcp.f32 %v2086_v17 }
 0x5da   : >> { %v2089_v19 = vpop.xlane.xlu0 %2088  ;;  %v4373_v36 = vpack.c.bf16 %v4624_v24, %v4623_v60 }
 0x5db   : >> { %4655 = vrcp.f32 %v2089_v19 }
 0x5dd   : >> { %v4648_v28 = vpop.eup %4647 }
 0x5de   : >> { %v4612_v23 = vpop.permute.xlu0 %4611  ;;  %v2101_v34 = vmul.f32 %v4648_v28, %v4634_v7 }
 0x5df   : >> { %v4614_v25 = vunpack.i.h.bf16 %v4612_v23  ;;  %v4613_v26 = vunpack.i.l.bf16 %v4612_v23 }
 0x5e1   : >> { %v4650_v30 = vpop.eup %4649  ;;  %v4365_v29 = vpack.c.bf16 %v4614_v25, %v4613_v26 }
 0x5e2   : >> { %v4652_v31 = vpop.eup %4651  ;;  %v2099_v32 = vmul.f32 %v4650_v30, %v4638_v56 }
 0x5e3   : >> { %v4654_v33 = vpop.eup %4653  ;;  %4366 = vmatprep.subr.bf16.mxu1 %v4365_v29  ;;  %v2097_v37 = vmul.f32 %v4652_v31, %v5232_v27  ;;  %v1524_v27 = vld [vmem:[%s1523_s26] sm:$0xff]  ;;  %s3380_s26 = scalar_lea.vmem %s5564_s22, %s4776_s4 }
 0x5e4   : >> { %4368 = vmatpush3.bf16.msra.mxu1 %v4365_v29  ;;  %4159 = vmatprep.mubr.msk.f32.mxu0 %vm1665_vm6, %v2099_v32  ;;  %v2103_v40 = vmul.f32 %v4654_v33, %v5239_v54  ;;  %v4377_v48 = vpack.c.bf16 %v1525_v46, %v1524_v27 }
 0x5e5   : >> { %4160 = vmatmul.mubr.msk.f32.vlgmr.msra.gmra.mrb[8].mxu0 %vm1665_vm6, %v2101_v34  ;;  %4374 = vmatprep.subr.bf16.mxu1 %v4373_v36  ;;  %v4656_v39 = vpop.eup %4655 }
 0x5e6   : >> { %v2105_v42 = vmul.f32 %v4656_v39, %v4640_v59  ;;  %4378 = vmatprep.subr.bf16.mxu0 %v4377_v48 }
 0x5e7   : >> { %4153 = vmatmul.mubr.msk.f32.vlgmr.msra.gmra.mrb[6].mxu1 %vm1665_vm6, %v2097_v37  ;;  %4380 = vmatpush3.bf16.msra.mxu0 %v4377_v48  ;;  %v2664_v48 = vld [vmem:[%s5310_s27] sm:$0xff] }
 0x5e8   : >> { %4376 = vmatpush3.bf16.msra.mxu1 %v4373_v36  ;;  %4166 = vmatprep.mubr.msk.f32.mxu1 %vm1665_vm6, %v2103_v40 }
 0x5e9   : >> { %4382 = vmatprep.subr.bf16.mxu0 %v4381_v50 }
 0x5eb   : >> { %4167 = vmatmul.mubr.msk.f32.vlgmr.msra.gmra.mrb[8].mxu1 %vm1665_vm6, %v2105_v42  ;;  %4384 = vmatpush3.bf16.msra.mxu0 %v4381_v50  ;;  %v4385_v50 = vpack.c.bf16 %v2665_v49, %v2664_v48 }
 0x5ed   : >> { %4386 = vmatprep.subr.bf16.mxu1 %v4385_v50 }
 0x5ee   : >> { %4388 = vmatpush3.bf16.msra.mxu1 %v4385_v50 }
 0x64b   : >> { %v4147_v51 = vpop.f32.mrb[4].mxu1 }
 0x64c   : >> { %v2184_v53 = vpop.f32.mrb[5].mxu1 }
 0x6b8   : >> { %v4161_v7 = vpop.f32.mrb[8].mxu0 }
 0x6b9   : >> { %2460 = vrot.lane.b32.xlu1 %v4161_v7, %s4783_s0  ;;  %v2358_v54 = vpop.f32.mrb[9].mxu0 }
 0x6ba   : >> { %2458 = vrot.lane.b32.xlu0 %v2358_v54, %s4783_s0  ;;  %v4154_v55 = vpop.f32.mrb[6].mxu1  ;;  %v2668_v54 = vld [vmem:[%s5310_s27 + $0x20] sm:$0xff] }
 0x6bb   : >> { %v2271_v56 = vpop.f32.mrb[7].mxu1 }
 0x6be   : >> { %v4168_v57 = vpop.f32.mrb[8].mxu1 }
 0x6bf   : >> { %2464 = vrot.lane.b32.xlu1 %v4168_v57, %s4783_s0  ;;  %v2445_v58 = vpop.f32.mrb[9].mxu1  ;;  %v2688_v57 = vld [vmem:[%s5325_s8 + $0x40] sm:$0xff] }
 0x6c0   : >> { %2462 = vrot.lane.b32.xlu0 %v2445_v58, %s4783_s0  ;;  %v2689_v58 = vld [vmem:[%s5325_s8 + $0x48] sm:$0xff]  ;;  %s2676_s0 = scalar_lea.vmem %s5560_s18, %s4776_s4  ;;  %s1510_s4 = sadd.s32 1, %s4776_s4  }
 0x6c1   : >> { %p1507_p11 = scmp.ge.s32.totalorder %s1510_s4, 2  }
 0x6c2   : > { %4673 = vset.pattern.permute.xlu0 (%p1507_p11), %v4778_v3  ;;  %vm4459_vm10 = vmpackc.low (%p1507_p11), %vm1175_vm5, %vm1175_vm5  ;;  %vm4785_vm11 = vmmov (%p1507_p11), 0   ;;  %v4786_v8 = vmov (%p1507_p11), 0.0   ;;  %v3458_v3 = vld [vmem:[%s5565_s23] sm:$0x1] (%p1507_p11)  ;;  %s3645_s29 = sshll.u32 (%p1507_p11), %s5122_s3, 4  ;;  %vm3628_vm12 = vcmask (%p1507_p11), 122880   ;;  %s5495_s29 = int_to_ptr.vmem [resolvable:$true] %s3645_s29 }
 0x6c3   : > { %s4787_s4 = smov (%p1507_p11), [#allocation3]  }
 0x72b   : >> { %v2461_v59 = vpop.permute.xlu1 %2460 }
 0x72c   : >> { %v2459_v61 = vpop.permute.xlu0 %2458  ;;  %v2471_v63 = vsel %vm1665_vm6, %v4147_v51, %v2461_v59  ;;  %v2666_v51 = vld [vmem:[%s5310_s27 + $0x10] sm:$0xff]  ;;  %v4425_v59 = vpack.c.bf16 %v2689_v58, %v2688_v57  ;;  %v2675_v58 = vld [vmem:[%s5310_s27 + $0x58] sm:$0xff] }
 0x72d   : >> { %v2470_v62 = vsel %vm1665_vm6, %v2184_v53, %v2459_v61  ;;  %v2667_v53 = vld [vmem:[%s5310_s27 + $0x18] sm:$0xff]  ;;  %v2690_v61 = vld [vmem:[%s5325_s8 + $0x50] sm:$0xff] }
 0x72e   : >> { %4177 = vmatprep.mubr.msk.f32.mxu0 %vm1175_vm5, %v2470_v62  ;;  %v4389_v7 = vpack.c.bf16 %v2667_v53, %v2666_v51  ;;  %v2691_v62 = vld [vmem:[%s5325_s8 + $0x58] sm:$0xff]  ;;  %4426 = vmatprep.subr.bf16.mxu0 %v4425_v59  ;;  %v2674_v57 = vld [vmem:[%s5310_s27 + $0x50] sm:$0xff] }
 0x72f   : >> { %4178 = vmatmul.mubr.msk.f32.vlgmr.msra.gmra.mrb[10].mxu0 %vm1175_vm5, %v2471_v63  ;;  %v4429_v63 = vpack.c.bf16 %v2691_v62, %v2690_v61  ;;  %v4405_v62 = vpack.c.bf16 %v2675_v58, %v2674_v57 }
 0x730   : >> { %4390 = vmatprep.subr.bf16.mxu1 %v4389_v7  ;;  %4428 = vmatpush3.bf16.msra.mxu0 %v4425_v59 }
 0x731   : >> { %v2465_v1 = vpop.permute.xlu1 %2464  ;;  %4392 = vmatpush3.bf16.msra.mxu1 %v4389_v7  ;;  %4430 = vmatprep.subr.bf16.mxu0 %v4429_v63 }
 0x732   : >> { %v2463_v2 = vpop.permute.xlu0 %2462  ;;  %v2473_v6 = vsel %vm1665_vm6, %v4154_v55, %v2465_v1  ;;  %v2669_v55 = vld [vmem:[%s5310_s27 + $0x28] sm:$0xff] }
 0x733   : >> { %v2472_v5 = vsel %vm1665_vm6, %v2271_v56, %v2463_v2  ;;  %v5318_v56 = vpack.c.bf16 %v2669_v55, %v2668_v54 }
 0x734   : >> { %4180 = vmatprep.mubr.msk.f32.mxu0 %vm1175_vm5, %v2472_v5  ;;  %4432 = vmatpush3.bf16.msra.mxu0 %v4429_v63 }
 0x735   : >> { %4181 = vmatmul.mubr.msk.f32.gmra.mrb[12].mxu0 %vm1175_vm5, %v2473_v6  ;;  %4394 = vmatprep.subr.bf16.mxu1 %v5318_v56 }
 0x802   : >> { %v4179_v11 = vpop.f32.mrb[10].mxu0 }
 0x803   : >> { %v2578_v12 = vadd.f32 %v4179_v11, %v3859_v10  ;;  %v2552_v52 = vpop.f32.mrb[11].mxu0 }
 0x804   : >> { %v2577_v14 = vadd.f32 %v3859_v10, %v2552_v52 }
 0x805   : >> { %v2582_v13 = vadd.f32 %v4768_v41, %v2578_v12 }
 0x806   : >> { %v2581_v0 = vadd.f32 %v4772_v43, %v2577_v14 }
 0x807   : >> { %v2592_v15 = vsel %vm1175_vm5, %v2582_v13, 0.0 }
 0x808   : >> { %2593 = vadd.xlane.f32.xlu1 %v2592_v15  ;;  %v4182_v16 = vpop.f32.mrb[12].mxu0  ;;  %v2589_v17 = vsel %vm1175_vm5, %v2581_v0, 0.0 }
 0x809   : >> { %2590 = vadd.xlane.f32.xlu0 %v2589_v17  ;;  %v2562_v18 = vpop.f32.mrb[13].mxu0  ;;  %v2580_v19 = vadd.f32 %v4182_v16, %v3859_v10  ;;  %v3860_v17 = vld [vmem:[%s2585_s25] ss:$0 sm:$0xff] }
 0x80a   : >> { %v2579_v20 = vadd.f32 %v3859_v10, %v2562_v18 }
 0x80b   : >> { %v2584_v60 = vadd.f32 %v4760_v44, %v2580_v19 }
 0x80c   : >> { %v2583_v23 = vadd.f32 %v4764_v45, %v2579_v20 }
 0x80d   : >> { %v2598_v41 = vsel %vm1175_vm5, %v2584_v60, 0.0 }
 0x80e   : >> { %v2595_v24 = vsel %vm1175_vm5, %v2583_v23, 0.0 }
 0x80f   : >> { %2596 = vadd.xlane.f32.xlu0 %v2595_v24 }
 0x813   : >> { %2599 = vadd.xlane.f32.xlu0 %v2598_v41 }
 0x895   : >> { %v2594_v43 = vpop.xlane.xlu1 %2593 }
 0x896   : >> { %v2603_v25 = vmul.f32 0.03125, %v2594_v43  ;;  %v2591_v26 = vpop.xlane.xlu0 %2590 }
 0x897   : >> { %v2602_v28 = vmul.f32 0.03125, %v2591_v26 }
 0x898   : >> { %v5286_v30 = vsub.f32 %v2582_v13, %v2603_v25 }
 0x899   : >> { %v5288_v29 = vsub.f32 %v2581_v0, %v2602_v28 }
 0x89a   : >> { %v2611_v31 = vmul.f32 %v5286_v30, %v5286_v30 }
 0x89b   : >> { %v2610_v45 = vmul.f32 %v5288_v29, %v5288_v29 }
 0x89c   : >> { %v2597_v32 = vpop.xlane.xlu0 %2596  ;;  %v2617_v44 = vsel %vm1175_vm5, %v2611_v31, 0.0  ;;  %v2670_v31 = vld [vmem:[%s5310_s27 + $0x30] sm:$0xff] }
 0x89d   : >> { %v2604_v33 = vmul.f32 0.03125, %v2597_v32  ;;  %2618 = vadd.xlane.f32.xlu0 %v2617_v44  ;;  %v2614_v34 = vsel %vm1175_vm5, %v2610_v45, 0.0 }
 0x89e   : >> { %2615 = vadd.xlane.f32.xlu1 %v2614_v34 }
 0x89f   : >> { %v5296_v36 = vsub.f32 %v2583_v23, %v2604_v33  ;;  %v3861_v23 = vld [vmem:[%s2587_s9] ss:$0 sm:$0xff] }
 0x8a0   : >> { %v2600_v37 = vpop.xlane.xlu0 %2599 }
 0x8a1   : >> { %v2605_v39 = vmul.f32 0.03125, %v2600_v37  ;;  %v2612_v40 = vmul.f32 %v5296_v36, %v5296_v36 }
 0x8a3   : >> { %v5300_v42 = vsub.f32 %v2584_v60, %v2605_v39  ;;  %v2620_v27 = vsel %vm1175_vm5, %v2612_v40, 0.0 }
 0x8a4   : >> { %2621 = vadd.xlane.f32.xlu1 %v2620_v27 }
 0x8a5   : >> { %v2613_v46 = vmul.f32 %v5300_v42, %v5300_v42 }
 0x8a7   : >> { %v2623_v47 = vsel %vm1175_vm5, %v2613_v46, 0.0  ;;  %v2673_v46 = vld [vmem:[%s5310_s27 + $0x48] sm:$0xff] }
 0x8a8   : >> { %2624 = vadd.xlane.f32.xlu0 %v2623_v47 }
 0x92a   : >> { %v2619_v1 = vpop.xlane.xlu0 %2618 }
 0x92b   : >> { %v2627_v2 = vmul.f32 0.03125, %v2619_v1  ;;  %v2616_v5 = vpop.xlane.xlu1 %2615 }
 0x92c   : >> { %v2626_v6 = vmul.f32 0.03125, %v2616_v5  ;;  %v2681_v5 = vld [vmem:[%s5325_s8 + $0x8] sm:$0xff] }
 0x92d   : >> { %v2631_v10 = vadd.f32 1e-05, %v2627_v2  ;;  %v2680_v2 = vld [vmem:[%s5325_s8] sm:$0xff] }
 0x92e   : >> { %v2630_v11 = vadd.f32 1e-05, %v2626_v6 }
 0x92f   : >> { %4657 = vrsqrt.f32 %v2631_v10  ;;  %v4409_v10 = vpack.c.bf16 %v2681_v5, %v2680_v2 }
 0x930   : >> { %4659 = vrsqrt.f32 %v2630_v11 }
 0x931   : >> { %v2622_v12 = vpop.xlane.xlu1 %2621 }
 0x932   : >> { %v2628_v52 = vmul.f32 0.03125, %v2622_v12  ;;  %v2682_v12 = vld [vmem:[%s5325_s8 + $0x10] sm:$0xff] }
 0x934   : >> { %v2632_v14 = vadd.f32 1e-05, %v2628_v52  ;;  %v2683_v52 = vld [vmem:[%s5325_s8 + $0x18] sm:$0xff] }
 0x935   : >> { %v2625_v13 = vpop.xlane.xlu0 %2624 }
 0x936   : >> { %4661 = vrsqrt.f32 %v2632_v14  ;;  %v2629_v0 = vmul.f32 0.03125, %v2625_v13  ;;  %v4413_v14 = vpack.c.bf16 %v2683_v52, %v2682_v12  ;;  %v2692_v13 = vld [vmem:[%s5325_s8 + $0x60] sm:$0xff] }
 0x938   : >> { %v2633_v15 = vadd.f32 1e-05, %v2629_v0  ;;  %v2693_v0 = vld [vmem:[%s5325_s8 + $0x68] sm:$0xff] }
 0x939   : >> { %v4658_v16 = vpop.eup %4657 }
 0x93a   : >> { %v4660_v18 = vpop.eup %4659  ;;  %v2639_v19 = vmul.f32 %v4658_v16, %v5286_v30  ;;  %4663 = vrsqrt.f32 %v2633_v15  ;;  %v4433_v15 = vpack.c.bf16 %v2693_v0, %v2692_v13  ;;  %v2684_v16 = vld [vmem:[%s5325_s8 + $0x20] sm:$0xff] }
 0x93b   : >> { %v2638_v20 = vmul.f32 %v4660_v18, %v5288_v29  ;;  %v2671_v29 = vld [vmem:[%s5310_s27 + $0x38] sm:$0xff] }
 0x93c   : >> { %v2649_v24 = vmul.f32 %v3860_v17, %v2639_v19  ;;  %v4397_v34 = vpack.c.bf16 %v2671_v29, %v2670_v31  ;;  %4434 = vmatprep.subr.bf16.mxu0 %v4433_v15  ;;  %v2694_v19 = vld [vmem:[%s5325_s8 + $0x70] sm:$0xff]  ;;  %v3874_v31 = vld [vmem:[%s2676_s0] ss:$0 sm:$0xff]  ;;  %s4678_s0 = sshll.u32 (%p1507_p11), %s4787_s4, 4  ;;  %s4679_s0 = int_to_ptr.vmem [resolvable:$false] %s4678_s0 }
 0x93d   : >> { %v2648_v60 = vmul.f32 %v3860_v17, %v2638_v20  ;;  %4436 = vmatpush3.bf16.msra.mxu0 %v4433_v15  ;;  %v2695_v20 = vld [vmem:[%s5325_s8 + $0x78] sm:$0xff]  ;;  %v2702_v15 = vld [vmem:[%s5325_s8 + $0xb0] sm:$0xff]  ;;  %p4681_p1 = scmp.lt.s32.totalorder (%p1507_p11), %s5495_s29, %s4679_s0 }
 0x93e   : >> { %v5341_v41 = vadd.f32 %v3861_v23, %v2649_v24  ;;  %v2686_v24 = vld [vmem:[%s5325_s8 + $0x30] sm:$0xff] }
 0x93f   : >> { %v5343_v43 = vadd.f32 %v3861_v23, %v2648_v60  ;;  %v2687_v60 = vld [vmem:[%s5325_s8 + $0x38] sm:$0xff] }
 0x940   : >> { %v4662_v25 = vpop.eup %4661  ;;  %v2707_v26 = vmul.f32 %v5341_v41, %v5102_v21 }
 0x941   : >> { %v2640_v28 = vmul.f32 %v4662_v25, %v5296_v36  ;;  %v2706_v30 = vmul.f32 %v5343_v43, %v5104_v22  ;;  %v2672_v36 = vld [vmem:[%s5310_s27 + $0x40] sm:$0xff]  ;;  %v4421_v25 = vpack.c.bf16 %v2687_v60, %v2686_v24 }
 0x942   : >> { %v2726_v45 = vrot.slane %v2707_v26, 6  ;;  %v4401_v50 = vpack.c.bf16 %v2673_v46, %v2672_v36  ;;  %v3887_v24 = vld [vmem:[%s2704_s2] ss:$0 sm:$0xff] }
 0x943   : >> { %v2725_v32 = vrot.slane %v2706_v30, 6  ;;  %v2650_v44 = vmul.f32 %v3860_v17, %v2640_v28  ;;  %v2714_v7 = vrot.slane %v2706_v30, 7  ;;  %v2697_v28 = vld [vmem:[%s5325_s8 + $0x88] sm:$0xff] }
 0x944   : >> { %v4664_v33 = vpop.eup %4663 }
 0x945   : >> { %v2641_v37 = vmul.f32 %v4664_v33, %v5300_v42  ;;  %v2733_v39 = vsel %vm2724_vm8, 0.0, %v2725_v32  ;;  %v2727_v40 = vsel %vm2724_vm8, %v2725_v32, %v2726_v45  ;;  %v5355_v27 = vadd.f32 %v3861_v23, %v2650_v44 }
 0x946   : >> { %4191 = vmatprep.mubr.msk.f32.mxu1 %vm1175_vm5, %v2733_v39  ;;  %v2722_v59 = vsel %vm1012_vm3, 0.0, %v2714_v7 }
 0x947   : >> { %v2651_v47 = vmul.f32 %v3860_v17, %v2641_v37  ;;  %4192 = vmatmul.mubr.msk.f32.vlgmr.msra.gmra.mrb[10].mxu1 %vm1175_vm5, %v2727_v40  ;;  %v2708_v48 = vmul.f32 %v5355_v27, %v5112_v38  ;;  %v2685_v17 = vld [vmem:[%s5325_s8 + $0x28] sm:$0xff] }
 0x948   : >> { %4396 = vmatpush3.bf16.msra.mxu1 %v5318_v56  ;;  %v2715_v56 = vrot.slane %v2707_v26, 7  ;;  %v4417_v18 = vpack.c.bf16 %v2685_v17, %v2684_v16  ;;  %v2703_v16 = vld [vmem:[%s5325_s8 + $0xb8] sm:$0xff] }
 0x949   : >> { %v2728_v42 = vrot.slane %v2708_v48, 6  ;;  %v5364_v49 = vadd.f32 %v3861_v23, %v2651_v47  ;;  %4398 = vmatprep.subr.bf16.mxu1 %v4397_v34  ;;  %v2717_v61 = vrot.slane %v2708_v48, 7  ;;  %v4437_v23 = vpack.c.bf16 %v2695_v20, %v2694_v19 }
 0x94a   : >> { %v2716_v63 = vsel %vm1012_vm3, %v2714_v7, %v2715_v56  ;;  %v4453_v17 = vpack.c.bf16 %v2703_v16, %v2702_v15 }
 0x94b   : >> { %v2734_v51 = vsel %vm2724_vm8, 0.0, %v2728_v42  ;;  %v2709_v53 = vmul.f32 %v5364_v49, %v5109_v35  ;;  %v2723_v6 = vsel %vm1012_vm3, 0.0, %v2717_v61  ;;  %4438 = vmatprep.subr.bf16.mxu0 %v4437_v23 }
 0x94c   : >> { %4194 = vmatprep.mubr.msk.f32.mxu1 %vm1175_vm5, %v2734_v51  ;;  %4400 = vmatpush3.bf16.msra.mxu1 %v4397_v34 }
 0x94d   : >> { %v2729_v54 = vrot.slane %v2709_v53, 6  ;;  %4402 = vmatprep.subr.bf16.mxu1 %v4401_v50  ;;  %v2718_v1 = vrot.slane %v2709_v53, 7  ;;  %4440 = vmatpush3.bf16.msra.mxu0 %v4437_v23 }
 0x94f   : >> { %v2730_v55 = vsel %vm2724_vm8, %v2728_v42, %v2729_v54  ;;  %v2719_v11 = vsel %vm1012_vm3, %v2717_v61, %v2718_v1  ;;  %v2699_v42 = vld [vmem:[%s5325_s8 + $0x98] sm:$0xff]  ;;  %v2701_v1 = vld [vmem:[%s5325_s8 + $0xa8] sm:$0xff] }
 0x950   : >> { %4195 = vmatmul.mubr.msk.f32.gmra.mrb[12].mxu1 %vm1175_vm5, %v2730_v55 }
 0x951   : >> { %4205 = vmatprep.mubr.msk.f32.mxu1 %vm1175_vm5, %v2722_v59 }
 0x954   : >> { %4206 = vmatmul.mubr.msk.f32.vlgmr.msra.gmra.mrb[10].mxu1 %vm1175_vm5, %v2716_v63  ;;  %v2700_v63 = vld [vmem:[%s5325_s8 + $0xa0] sm:$0xff] }
 0x955   : >> { %4208 = vmatprep.mubr.msk.f32.mxu1 %vm1175_vm5, %v2723_v6  ;;  %4404 = vmatpush3.bf16.msra.mxu1 %v4401_v50  ;;  %v4449_v12 = vpack.c.bf16 %v2701_v1, %v2700_v63 }
 0x956   : >> { %4406 = vmatprep.subr.bf16.mxu1 %v4405_v62 }
 0x958   : >> { %4209 = vmatmul.mubr.msk.f32.gmra.mrb[12].mxu1 %vm1175_vm5, %v2719_v11 }
 0x959   : >> { %4408 = vmatpush3.bf16.msra.mxu1 %v4405_v62  ;;  %4219 = vmatprep.mubr.msk.f32.mxu1 %vm1175_vm5, %v2706_v30 }
 0x95a   : >> { %4410 = vmatprep.subr.bf16.mxu1 %v4409_v10 }
 0x95c   : >> { %4220 = vmatmul.mubr.msk.f32.vlgmr.msra.gmra.mrb[10].mxu1 %vm1175_vm5, %v2707_v26  ;;  %v2696_v26 = vld [vmem:[%s5325_s8 + $0x80] sm:$0xff] }
 0x95d   : >> { %4222 = vmatprep.mubr.msk.f32.mxu1 %vm1175_vm5, %v2708_v48  ;;  %4412 = vmatpush3.bf16.msra.mxu1 %v4409_v10  ;;  %v4441_v30 = vpack.c.bf16 %v2697_v28, %v2696_v26  ;;  %v2698_v48 = vld [vmem:[%s5325_s8 + $0x90] sm:$0xff]  ;;  %s3905_s8 = sshll.u32 (%p1507_p11), %s4944_s24, 5  ;;  %s5619_s24 = sand.u32 (%p1507_p11), 1, %s4748_s30  }
 0x95e   : >> { %4414 = vmatprep.subr.bf16.mxu1 %v4413_v14  ;;  %v4445_v57 = vpack.c.bf16 %v2699_v42, %v2698_v48 }
 0x95f   : >> { %4442 = vmatprep.subr.bf16.mxu0 %v4441_v30 }
 0x960   : >> { %4223 = vmatmul.mubr.msk.f32.gmra.mrb[12].mxu1 %vm1175_vm5, %v2709_v53 }
 0x961   : >> { %4416 = vmatpush3.bf16.msra.mxu1 %v4413_v14 }
 0x962   : >> { %4418 = vmatprep.subr.bf16.mxu1 %v4417_v18 }
 0x965   : >> { %4420 = vmatpush3.bf16.msra.mxu1 %v4417_v18 }
 0x966   : >> { %4422 = vmatprep.subr.bf16.mxu1 %v4421_v25 }
 0x969   : >> { %4424 = vmatpush3.bf16.msra.mxu1 %v4421_v25 }
 0xa2f   : >> { %v4221_v29 = vpop.f32.mrb[10].mxu1 }
 0xa30   : >> { %v3033_v45 = vadd.f32 %v4221_v29, %v3874_v31  ;;  %v3003_v32 = vpop.f32.mrb[11].mxu1 }
 0xa31   : >> { %v3032_v44 = vadd.f32 %v3874_v31, %v3003_v32 }
 0xa32   : >> { %v3037_v33 = vmax.f32 %v3033_v45, 0.0 }
 0xa33   : >> { %v3036_v34 = vmax.f32 %v3032_v44, 0.0  ;;  %v4224_v37 = vpop.f32.mrb[12].mxu1 }
 0xa34   : >> { %v3041_v39 = vmul.f32 %v3037_v33, %v5102_v21  ;;  %v3035_v40 = vadd.f32 %v4224_v37, %v3874_v31  ;;  %v3013_v36 = vpop.f32.mrb[13].mxu1 }
 0xa35   : >> { %v3040_v46 = vmul.f32 %v3036_v34, %v5104_v22  ;;  %v3034_v47 = vadd.f32 %v3874_v31, %v3013_v36 }
 0xa36   : >> { %v3049_v50 = vrot.slane %v3041_v39, 7  ;;  %v3059_v51 = vrot.slane %v3041_v39, 6  ;;  %v3039_v53 = vmax.f32 %v3035_v40, 0.0 }
 0xa37   : >> { %v3038_v7 = vmax.f32 %v3034_v47, 0.0  ;;  %v3058_v54 = vrot.slane %v3040_v46, 6  ;;  %v3048_v55 = vrot.slane %v3040_v46, 7 }
 0xa38   : >> { %v3043_v56 = vmul.f32 %v3039_v53, %v5109_v35 }
 0xa39   : >> { %v3042_v58 = vmul.f32 %v3038_v7, %v5112_v38  ;;  %v3066_v59 = vsel %vm2724_vm8, 0.0, %v3058_v54  ;;  %v3050_v61 = vsel %vm1012_vm3, %v3048_v55, %v3049_v50  ;;  %v3056_v62 = vsel %vm1012_vm3, 0.0, %v3048_v55 }
 0xa3a   : >> { %v3062_v2 = vrot.slane %v3043_v56, 6  ;;  %4241 = vmatprep.mubr.msk.f32.mxu1 %vm3068_vm9, %v3066_v59  ;;  %4263 = vmatprep.mubr.msk.f32.mxu0 %vm3068_vm9, %v3056_v62  ;;  %v3060_v5 = vsel %vm2724_vm8, %v3058_v54, %v3059_v51  ;;  %v3052_v6 = vrot.slane %v3043_v56, 7 }
 0xa3b   : >> { %4242 = vmatmul.mubr.msk.f32.vlgmr.msra.gmra.mrb[14].mxu1 %vm3068_vm9, %v3060_v5  ;;  %4264 = vmatmul.mubr.msk.f32.vlgmr.msra.gmra.mrb[14].mxu0 %vm3068_vm9, %v3050_v61  ;;  %v3061_v10 = vrot.slane %v3042_v58, 6  ;;  %v3051_v11 = vrot.slane %v3042_v58, 7 }
 0xa3c   : >> { %4444 = vmatpush3.bf16.msra.mxu0 %v4441_v30 }
 0xa3d   : >> { %v3067_v52 = vsel %vm2724_vm8, 0.0, %v3061_v10  ;;  %v3057_v14 = vsel %vm1012_vm3, 0.0, %v3051_v11  ;;  %4446 = vmatprep.subr.bf16.mxu0 %v4445_v57  ;;  %v3063_v13 = vsel %vm2724_vm8, %v3061_v10, %v3062_v2  ;;  %v3053_v0 = vsel %vm1012_vm3, %v3051_v11, %v3052_v6 }
 0xa3e   : >> { %4244 = vmatprep.mubr.msk.f32.mxu1 %vm3068_vm9, %v3067_v52  ;;  %4266 = vmatprep.mubr.msk.f32.mxu0 %vm3068_vm9, %v3057_v14 }
 0xa3f   : >> { %4245 = vmatmul.mubr.msk.f32.gmra.mrb[16].mxu1 %vm3068_vm9, %v3063_v13  ;;  %4267 = vmatmul.mubr.msk.f32.gmra.mrb[16].mxu0 %vm3068_vm9, %v3053_v0 }
 0xa40   : >> { %4448 = vmatpush3.bf16.msra.mxu0 %v4445_v57  ;;  %4285 = vmatprep.mubr.msk.f32.mxu0 %vm3068_vm9, %v3040_v46 }
 0xa41   : >> { %4450 = vmatprep.subr.bf16.mxu0 %v4449_v12  ;;  %4302 = vmatprep.mubr.msk.f32.mxu1 (%p1507_p11), %vm4785_vm11, %v4786_v8 }
 0xa44   : >> { %4452 = vmatpush3.bf16.msra.mxu0 %v4449_v12 }
 0xa45   : >> { %4454 = vmatprep.subr.bf16.mxu0 %v4453_v17 }
 0xa48   : >> { %4456 = vmatpush3.bf16.msra.mxu0 %v4453_v17 }
 0xa4b   : >> { %4286 = vmatmul.mubr.msk.f32.vlgmr.msra.gmra.mrb[14].mxu0 %vm3068_vm9, %v3041_v39 }
 0xa4c   : >> { %4288 = vmatprep.mubr.msk.f32.mxu0 %vm3068_vm9, %v3042_v58 }
 0xa4f   : >> { %4289 = vmatmul.mubr.msk.f32.gmra.mrb[16].mxu0 %vm3068_vm9, %v3043_v56 }
 0xa50   : > { %4295 = vmatprep.mubr.msk.f32.mxu0 (%p1507_p11), %vm4785_vm11, %v4786_v8 }
 0xb0e   : >> { %v4243_v18 = vpop.f32.mrb[14].mxu1 }
 0xb0f   : >> { %v3145_v19 = vpop.f32.mrb[15].mxu1 }
 0xb12   : >> { %v4246_v20 = vpop.f32.mrb[16].mxu1 }
 0xb13   : >> { %v3155_v23 = vpop.f32.mrb[17].mxu1 }
 0xb1e   : >> { %v4287_v60 = vpop.f32.mrb[14].mxu0 }
 0xb1f   : >> { %v4477_v25 = vadd.f32 %v4287_v60, %v4243_v18  ;;  %v3337_v26 = vpop.f32.mrb[15].mxu0 }
 0xb20   : >> { %v4478_v28 = vadd.f32 %v3337_v26, %v3145_v19 }
 0xb21   : >> { %v3367_v30 = vadd.f32 %v4477_v25, %v3887_v24  ;;  %v3888_v25 = vld [vmem:[%s3378_s7] ss:$0 sm:$0xff]  ;;  %s5617_s7 = sld [smem:[#allocation23_spill]] (%p1507_p11) }
 0xb22   : >> { %v3366_v31 = vadd.f32 %v4478_v28, %v3887_v24  ;;  %v4290_v29 = vpop.f32.mrb[16].mxu0 }
 0xb23   : >> { %v3371_v45 = vmul.f32 %v3367_v30, %v5102_v21  ;;  %v4479_v32 = vadd.f32 %v4290_v29, %v4246_v20  ;;  %v3347_v44 = vpop.f32.mrb[17].mxu0  ;;  %v3889_v30 = vld [vmem:[%s3380_s26] ss:$0 sm:$0xff]  ;;  %s4674_s26 = scalar_lea.vmem (%p1507_p11), %s5495_s29, 32 }
 0xb24   : >> { %v3370_v33 = vmul.f32 %v3366_v31, %v5104_v22  ;;  %v4480_v34 = vadd.f32 %v3347_v44, %v3155_v23  ;;  %p4675_p12 = scmp.ne.s32.totalorder (%p1507_p11), %s5495_s29, %s4674_s26 }
 0xb25   : >> { %v3369_v37 = vadd.f32 %v4479_v32, %v3887_v24  ;;  %v3375_v39 = vadd.f32 %v3371_v45, %v5341_v41 }
 0xb26   : >> { %v3368_v40 = vadd.f32 %v4480_v34, %v3887_v24  ;;  %v3374_v36 = vadd.f32 %v3370_v33, %v5343_v43  ;;  %p4676_p13 = pnand (%p1507_p11), %p4675_p12, %p4961_p5 }
 0xb27   : >> { %v3373_v46 = vmul.f32 %v3369_v37, %v5109_v35  ;;  %v3385_v47 = vsel %vm1175_vm5, %v3375_v39, 0.0  ;;  %s5618_s9 = smov (%p1507_p11), %s5617_s7  ;;  %s5493_s27 = scalar_lea.hbm (%p1507_p11), %s5617_s7, %s3905_s8 }
 0xb28   : >> { %v3372_v48 = vmul.f32 %v3368_v40, %v5112_v38  ;;  %3386 = vadd.xlane.f32.xlu0 %v3385_v47  ;;  %v3382_v42 = vsel %vm1175_vm5, %v3374_v36, 0.0  ;;  %p4677_p0 = pneg (%p1507_p11), %p4676_p13  ;;  %s4680_s8 = scalar_lea.vmem (%p1507_p11), %s4679_s0, 64 }
 0xb29   : >> { %3383 = vadd.xlane.f32.xlu1 %v3382_v42  ;;  %v3377_v50 = vadd.f32 %v3373_v46, %v5364_v49  ;;  %p4682_p2 = scmp.lt.s32.totalorder (%p1507_p11), %s4680_s8, %s4674_s26 }
 0xb2a   : >> { %v3376_v51 = vadd.f32 %v3372_v48, %v5355_v27 }
 0xb2b   : >> { %v3391_v53 = vsel %vm1175_vm5, %v3377_v50, 0.0  ;;  %p4683_p3 = por (%p1507_p11), %p4682_p2, %p4681_p1 }
 0xb2c   : >> { %3392 = vadd.xlane.f32.xlu0 %v3391_v53  ;;  %v3388_v41 = vsel %vm1175_vm5, %v3376_v51, 0.0  ;;  %v4784_v53 = vmov (%p1507_p11), 0.0|0.0  }
 0xb2d   : >> { %3389 = vadd.xlane.f32.xlu1 %v3388_v41  ;;  %4457 = vmatprep.subr.bf16.mxu0 (%p1507_p11), %v4784_v53  ;;  %p4684_p4 = pnand (%p1507_p11), %p4683_p3, %p4677_p0 }
 0xb2e   : > { %4461 = vmatprep.subr.bf16.mxu1 (%p1507_p11), %v4784_v53 }
 0xbb5   : >> { %v3387_v43 = vpop.xlane.xlu0 %3386 }
 0xbb6   : >> { %v3395_v7 = vmul.f32 0.03125, %v3387_v43  ;;  %v3384_v54 = vpop.xlane.xlu1 %3383 }
 0xbb7   : >> { %v3394_v55 = vmul.f32 0.03125, %v3384_v54 }
 0xbb8   : >> { %v3399_v56 = vsub.f32 %v3375_v39, %v3395_v7 }
 0xbb9   : >> { %v3398_v57 = vsub.f32 %v3374_v36, %v3394_v55  ;;  %v3393_v58 = vpop.xlane.xlu0 %3392 }
 0xbba   : >> { %v3397_v59 = vmul.f32 0.03125, %v3393_v58  ;;  %v3390_v61 = vpop.xlane.xlu1 %3389  ;;  %v3403_v62 = vmul.f32 %v3399_v56, %v3399_v56 }
 0xbbb   : >> { %v3396_v63 = vmul.f32 0.03125, %v3390_v61  ;;  %v3402_v49 = vmul.f32 %v3398_v57, %v3398_v57 }
 0xbbc   : >> { %v3401_v1 = vsub.f32 %v3377_v50, %v3397_v59  ;;  %v3409_v27 = vsel %vm1175_vm5, %v3403_v62, 0.0 }
 0xbbd   : >> { %v3400_v2 = vsub.f32 %v3376_v51, %v3396_v63  ;;  %3410 = vadd.xlane.f32.xlu0 %v3409_v27  ;;  %v3406_v5 = vsel %vm1175_vm5, %v3402_v49, 0.0  ;;  %v3459_v51 = vld [vmem:[#allocation2] sm:$0x1] (%p1507_p11) }
 0xbbe   : >> { %3407 = vadd.xlane.f32.xlu1 %v3406_v5  ;;  %v3405_v6 = vmul.f32 %v3401_v1, %v3401_v1 }
 0xbbf   : >> { %v3404_v10 = vmul.f32 %v3400_v2, %v3400_v2 }
 0xbc0   : >> { %v3415_v11 = vsel %vm1175_vm5, %v3405_v6, 0.0 }
 0xbc1   : >> { %3416 = vadd.xlane.f32.xlu0 %v3415_v11  ;;  %v3412_v12 = vsel %vm1175_vm5, %v3404_v10, 0.0 }
 0xbc2   : >> { %3413 = vadd.xlane.f32.xlu1 %v3412_v12 }
 0xbd7   : > { %3462 = vperm.xlu0 (%p1507_p11), %4673, %v3459_v51  }
 0xc4a   : >> { %v3411_v52 = vpop.xlane.xlu0 %3410 }
 0xc4b   : >> { %v3419_v14 = vmul.f32 0.03125, %v3411_v52  ;;  %v3408_v13 = vpop.xlane.xlu1 %3407 }
 0xc4c   : >> { %v3418_v0 = vmul.f32 0.03125, %v3408_v13 }
 0xc4d   : >> { %v3423_v15 = vadd.f32 1e-05, %v3419_v14 }
 0xc4e   : >> { %v3422_v16 = vadd.f32 1e-05, %v3418_v0  ;;  %v3417_v17 = vpop.xlane.xlu0 %3416 }
 0xc4f   : >> { %4665 = vrsqrt.f32 %v3423_v15  ;;  %v3421_v18 = vmul.f32 0.03125, %v3417_v17  ;;  %v3414_v19 = vpop.xlane.xlu1 %3413 }
 0xc50   : >> { %4667 = vrsqrt.f32 %v3422_v16  ;;  %v3420_v20 = vmul.f32 0.03125, %v3414_v19 }
 0xc51   : >> { %v3425_v23 = vadd.f32 1e-05, %v3421_v18 }
 0xc52   : >> { %v3424_v24 = vadd.f32 1e-05, %v3420_v20 }
 0xc53   : >> { %4669 = vrsqrt.f32 %v3425_v23 }
 0xc54   : >> { %4671 = vrsqrt.f32 %v3424_v24 }
 0xc59   : >> { %v4666_v60 = vpop.eup %4665 }
 0xc5a   : >> { %v4668_v26 = vpop.eup %4667  ;;  %v3431_v28 = vmul.f32 %v4666_v60, %v3399_v56  ;;  %v3625_v56 = vld [vmem:[%s4993_s5 + $0x1] sm:$0x1] (%p1507_p11) }
 0xc5b   : >> { %v3430_v31 = vmul.f32 %v4668_v26, %v3398_v57 }
 0xc5c   : >> { %v3441_v29 = vmul.f32 %v3888_v25, %v3431_v28 }
 0xc5d   : >> { %v4670_v45 = vpop.eup %4669  ;;  %v3440_v32 = vmul.f32 %v3888_v25, %v3430_v31 }
 0xc5e   : >> { %v4672_v44 = vpop.eup %4671  ;;  %v3451_v33 = vadd.f32 %v3889_v30, %v3441_v29   ;;  %v3433_v34 = vmul.f32 %v4670_v45, %v3401_v1 }
 0xc5f   : >> { %v3450_v37 = vadd.f32 %v3889_v30, %v3440_v32   ;;  %v3432_v39 = vmul.f32 %v4672_v44, %v3400_v2  ;;  %1509 = sbr.rel (!%p1507_p11) target bundleno = 495 (0x1ef), region = 186 }
 0xc60   : >> { %v3443_v40 = vmul.f32 %v3888_v25, %v3433_v34  ;;  %v5614_v41 = vmov %v3451_v33  ;;  %v3455_v42 = vmul.f32 (%p1507_p11), %v3451_v33, %v5102_v21  ;;  %v3467_v21 = vsub.s32 (%p1507_p11), 0, %v4981_v4 }
 0xc61   : >> { %v3442_v36 = vmul.f32 %v3888_v25, %v3432_v39  ;;  %v5615_v43 = vmov %v3450_v37  ;;  %v3454_v48 = vmul.f32 (%p1507_p11), %v3450_v37, %v5104_v22  ;;  %v3463_v22 = vpop.permute.xlu0 (%p1507_p11), %3462  ;;  %v3624_v41 = vld [vmem:[%s4993_s5] sm:$0x1] (%p1507_p11)  ;;  %s5501_s5 = scalar_lea.sflag (%p1507_p11), [#allocation4], %s5619_s24 }
 0xc62   : >> { %v3453_v46 = vadd.f32 %v3889_v30, %v3443_v40  }
 0xc63   : >> { %v3452_v47 = vadd.f32 %v3889_v30, %v3442_v36   ;;  %v4458_v7 = vpack.c.bf16 (%p1507_p11), %v3455_v42, %v3454_v48 }
 0xc64   : >> { %v5612_v44 = vmov %v3453_v46  ;;  %v3457_v43 = vmul.f32 (%p1507_p11), %v3453_v46, %v5109_v35  ;;  %v3468_v35 = vrot.slane (%p1507_p11), %v3463_v22, %v3467_v21 }
 0xc65   : >> { %v5613_v45 = vmov %v3452_v47  ;;  %v3456_v50 = vmul.f32 (%p1507_p11), %v3452_v47, %v5112_v38  ;;  %4460 = vmatpush3.bf16.xpose.msk.msra.mxu0 (%p1507_p11), %vm4459_vm10, %v4458_v7 }
 0xc67   : > { %v4462_v9 = vpack.c.bf16 %v3457_v43, %v3456_v50 }
 0xc69   : > { %4464 = vmatpush3.bf16.xpose.msk.msra.mxu1 %vm4459_vm10, %v4462_v9 }
 0xc6c   : > { %4296 = vmatmul.mubr.msk.f32.vlgmr.msra.gmra.mrb[0].mxu0 %vm1175_vm5, %v3458_v3 }
 0xc70   : > { %4303 = vmatmul.mubr.msk.f32.vlgmr.msra.gmra.mrb[0].mxu1 %vm1175_vm5, %v3458_v3 }
 0xd3f   : > { %v3544_v38 = vpop.f32.mrb[0].mxu0 }
 0xd40   : > { %v3545_v54 = vadd.f32 %v3544_v38, %v3468_v35  ;;  %v4297_v57 = vpop.f32.mrb[1].mxu0 }
 0xd42   : > { %v3626_v61 = vmul.f32 %v3624_v41, %v3545_v54 }
 0xd43   : > { %v3620_v55 = vpop.f32.mrb[0].mxu1 }
 0xd44   : > { %v3621_v58 = vadd.f32 %v3620_v55, %v3468_v35  ;;  %v4304_v59 = vpop.f32.mrb[1].mxu1  ;;  %3629 = vst.msk [vmem:[%s5122_s3] sm:$0x1] %vm3628_vm12, %v3626_v61 }
 0xd46   : > { %v3627_v4 = vmul.f32 %v3625_v56, %v3621_v58 }
 0xd48   : > { %3630 = vst.msk [vmem:[%s5122_s3 + $0x1] sm:$0x1] %vm3628_vm12, %v3627_v4 }
 0xd49   : > { %4687 = shalt.err (!%p4684_p4)
}
 0xd4a   : > { %s4688_s3 = scalar_lea.hbm %s5493_s27, 32  ;;  %s4692_s7 = scalar_lea.hbm %s5618_s9, 64 }
 0xd4b   : > { %p4689_p7 = scmp.ne.s32.totalorder %s5493_s27, %s4688_s3  ;;  %p4693_p10 = scmp.lt.u32.totalorder %s5493_s27, %s5618_s9 }
 0xd4c   : > { %p4694_p11 = scmp.lt.u32.totalorder %s4692_s7, %s4688_s3  ;;  %p4696_p13 = scmp.lt.u32.totalorder %s4688_s3, %s5493_s27 }
 0xd4d   : > { %p4690_p8 = pnand %p4689_p7, %p4961_p5 }
 0xd4e   : > { %p4695_p12 = por %p4694_p11, %p4693_p10 }
 0xd4f   : > { %p4691_p9 = pneg %p4690_p8 }
 0xd50   : > { %p4697_p0 = por %p4696_p13, %p4695_p12 }
 0xd52   : > { %p4698_p1 = pnand %p4697_p0, %p4691_p9 }
 0xd54   : > { %4701 = shalt.err (!%p4698_p1)
}
 0xd55   : > { %s4788_s26 = smov 16   ;;  %s4789_s0 = smov 1  }
 0xd56   : > { %4493 = dma.vmem_to_hbm [thread:$0]  (%p4961_p5), %s5495_s29, 32, %s5493_s27, %s5501_s5, %s4788_s26, %s4788_s26, %s4789_s0  }
 0xd57 PF: > { %s5620_s8 = sld [smem:[#allocation8_spill]]  ;;  %s5621_s25 = sld [smem:[#allocation6_spill]] }
 0xd5d   : > { %p4499_p2 = scmp.ge.s32.totalorder %s5620_s8, 2  ;;  %s3660_s24 = sand.u32 1, %s5621_s25  }
 0xd5e   : > { %s3661_s3 = scalar_lea.sflag [#allocation4], %s3660_s24 }
 0xd5f   : > { %p4496_p3 = pnand %p4499_p2, %p4965_p6 }
 0xd61   : > { %4739 = dma.done.wait (!%p4496_p3), %s3661_s3, 32  }
 0xd62   : > { %4741 = vsyncadd (!%p4496_p3), %s3661_s3, 4294967264  ;;  %s5623_s3 = sld [smem:[#allocation9_spill]]  ;;  %s5624_s7 = sld [smem:[#allocation7_spill]] }
 0xd63   : > { %s5625_s4 = sld [smem:[#allocation10_spill]]  ;;  %s5626_s6 = smov %s4748_s30 }
 0xd68   : > { %p37_p4 = scmp.ge.s32.totalorder %s5623_s3, 4   ;;  %s5627_s30 = smov %s5624_s7 }
 0xd69   : > { %s5628_s7 = smov %s5625_s4 }
 0xd6a   :  { %39 = sbr.rel (!%p37_p4) target bundleno = 15 (0xf), region = 197 }
 0xd71   :  { %3666 = vsyncpa [#allocation4], 1 }
 0xd72   :  { %3668 = vsyncpa [#allocation4 + $0x1], 1 }

</bundles_post_ra>
